<compile_context>
chip_gen: v7x
topology: tpu7x:2x2x1
jax: 0.10.0
libtpu: 0.0.40
codegen_flags: <defaults>
</compile_context>

<pallas_src>
import math

import jax
import jax.numpy as jnp
from jax.experimental import pallas as pl
from jax.experimental.pallas import tpu as pltpu

# ----------------------------- model config ---------------------------------
N_LAYERS = 2      # n_attention_heads in the PyTorch ctor == number of stacked layers
N_HEADS  = 4      # heads inside MultiHeadedAttention
D_MODEL  = 32
D_FF     = 64
SEQ      = 8
BATCH    = 2
LN_EPS   = 1e-6

_VEC_ROWS_PER_LAYER = 8   # ln1a, ln1b, bqkv, bo, ln2a, ln2b, b1, b2
_VEC_WIDTH = 128          # lane-dense parameter rows


# ------------------------------- kernel -------------------------------------
def _layer_norm(v, a, b, d):
    # PyTorch (annotated transformer): a * (x - mean) / (x.std(unbiased) + eps) + b
    mean = jnp.mean(v, axis=-1, keepdims=True)
    var = jnp.sum((v - mean) ** 2, axis=-1, keepdims=True) * (1.0 / (d - 1))
    return a * (v - mean) / (jnp.sqrt(var) + LN_EPS) + b


def encoder_kernel(x_ref, mask_ref, wqkv_ref, wo_ref, w1_ref, w2_ref, vecs_ref,
                   out_ref):
    # Shapes: x (B*S, D), mask (B, 1, S), wqkv (L, D, 3D), wo (L, D, D),
    # w1 (L, D, Dff), w2 (L, Dff, D), vecs (8L+2, 128), out (B*S, D).
    RS, D = x_ref.shape
    B, _, S = mask_ref.shape
    L = wqkv_ref.shape[0]
    Dff = w1_ref.shape[-1]
    H = N_HEADS
    dk = D // H
    scale = 1.0 / math.sqrt(dk)

    def vrow(r, width):                      # one packed parameter row -> (1, width)
        return vecs_ref[r:r + 1, 0:width]

    x = x_ref[...].astype(jnp.float32)       # batch already folded into rows

    # Additive attention-mask bias, hoisted out of the layer loop.
    # (B, 1, S) -> (H*B, 1, S) matching the batched-head index n = h*B + b.
    bias = jnp.where(mask_ref[...] == 0.0, jnp.float32(-1e9), jnp.float32(0.0))
    bias = jnp.broadcast_to(bias[None], (H, B, 1, S)).reshape(H * B, 1, S)

    for l in range(L):                       # static unroll over layers
        r0 = _VEC_ROWS_PER_LAYER * l

        # ---- sublayer 1: pre-norm fused-QKV multi-head attention + residual ----
        y = _layer_norm(x, vrow(r0 + 0, D), vrow(r0 + 1, D), D)
        qkv = (jnp.dot(y, wqkv_ref[l], preferred_element_type=jnp.float32)
               + vrow(r0 + 2, 3 * D))                            # (B*S, 3D)

        def head_split(col0):                # -> (H*B, S, dk), n = h*B + b
            return jnp.stack(
                [qkv[:, col0 + h * dk: col0 + (h + 1) * dk] for h in range(H)],
                axis=0).reshape(H * B, S, dk)

        qh = head_split(0)
        kh = head_split(D)
        vh = head_split(2 * D)

        scores = (jnp.einsum("nqd,nkd->nqk", qh, kh,
                             preferred_element_type=jnp.float32) * scale
                  + bias)                                        # (H*B, S, S)
        scores = scores - jnp.max(scores, axis=-1, keepdims=True)
        p = jnp.exp(scores)
        p = p * pl.reciprocal(jnp.sum(p, axis=-1, keepdims=True), approx=True)
        ctx = jnp.einsum("nqk,nkd->nqd", p, vh,
                         preferred_element_type=jnp.float32)     # (H*B, S, dk)

        # Heads back into the lane dimension, then ONE (D, D) output matmul.
        ctx = ctx.reshape(H, RS, dk)
        ctx = jnp.concatenate([ctx[h] for h in range(H)], axis=-1)   # (B*S, D)
        x = x + (jnp.dot(ctx, wo_ref[l], preferred_element_type=jnp.float32)
                 + vrow(r0 + 3, D))          # dropout == identity at eval

        # ---- sublayer 2: pre-norm position-wise FFN + residual ----
        y = _layer_norm(x, vrow(r0 + 4, D), vrow(r0 + 5, D), D)
        h1 = jnp.maximum(jnp.dot(y, w1_ref[l], preferred_element_type=jnp.float32)
                         + vrow(r0 + 6, Dff), 0.0)
        x = x + (jnp.dot(h1, w2_ref[l], preferred_element_type=jnp.float32)
                 + vrow(r0 + 7, D))

    # ---- final LayerNorm of the Encoder ----
    fr = _VEC_ROWS_PER_LAYER * L
    out = _layer_norm(x, vrow(fr + 0, D), vrow(fr + 1, D), D)
    out_ref[...] = out.astype(out_ref.dtype)


# ------------------------------- wrapper -------------------------------------
def encoder_forward(x, mask, params):
    B, S, D = x.shape
    L = params["wq"].shape[0]

    # ---- pack parameters into a handful of slabs (few, larger DMAs) ----
    wqkv = jnp.concatenate([params["wq"], params["wk"], params["wv"]], axis=-1)  # (L, D, 3D)
    wo, w1, w2 = params["wo"], params["w1"], params["w2"]

    def pad_row(v):
        return jnp.pad(v, (0, _VEC_WIDTH - v.shape[0]))

    rows = []
    for l in range(L):
        rows += [pad_row(params["ln1a"][l]), pad_row(params["ln1b"][l]),
                 pad_row(jnp.concatenate([params["bq"][l], params["bk"][l],
                                          params["bv"][l]])),
                 pad_row(params["bo"][l]), pad_row(params["ln2a"][l]),
                 pad_row(params["ln2b"][l]), pad_row(params["b1"][l]),
                 pad_row(params["b2"][l])]
    rows += [pad_row(params["fna"][0]), pad_row(params["fnb"][0])]
    vecs = jnp.stack(rows, axis=0)            # (8L + 2, 128), lane-dense

    # Batch fold is free layout plumbing in the wrapper (XLA metadata only).
    x2d = x.reshape(B * S, D)

    # Single invocation, no grid: whole working set (< 100 KiB) lives in VMEM
    # on every TPU generation, so grid steps / batch splits are pure overhead.
    # TODO(synk): out last dim is D=32 (masked partial stores); a lane-dense
    # (B, S*D) output would need an in-kernel minor-dim reshape that is not
    # worth the lowering risk at this size.
    out2d = pl.pallas_call(
        encoder_kernel,
        out_shape=jax.ShapeDtypeStruct((B * S, D), jnp.float32),
    )(x2d, mask, wqkv, wo, w1, w2, vecs)

    return out2d.reshape(B, S, D)


# ------------------------- pure-JAX reference --------------------------------
def encoder_reference(x, mask, params):
    B, S, D = x.shape
    H, dk = N_HEADS, D // N_HEADS
    scale = 1.0 / math.sqrt(dk)

    def ln(v, a, b):
        mean = jnp.mean(v, axis=-1, keepdims=True)
        var = jnp.sum((v - mean) ** 2, axis=-1, keepdims=True) / (D - 1)
        return a * (v - mean) / (jnp.sqrt(var) + LN_EPS) + b

    out = x
    for l in range(N_LAYERS):
        y = ln(out, params["ln1a"][l], params["ln1b"][l])
        q = y @ params["wq"][l] + params["bq"][l]
        k = y @ params["wk"][l] + params["bk"][l]
        v = y @ params["wv"][l] + params["bv"][l]
        q = q.reshape(B, S, H, dk).transpose(0, 2, 1, 3)
        k = k.reshape(B, S, H, dk).transpose(0, 2, 1, 3)
        v = v.reshape(B, S, H, dk).transpose(0, 2, 1, 3)
        scores = jnp.einsum("bhqd,bhkd->bhqk", q, k) * scale
        scores = jnp.where(mask[:, None, :, :] == 0.0, -1e9, scores)
        p = jax.nn.softmax(scores, axis=-1)
        ctx = jnp.einsum("bhqk,bhkd->bhqd", p, v).transpose(0, 2, 1, 3).reshape(B, S, D)
        out = out + (ctx @ params["wo"][l] + params["bo"][l])

        y = ln(out, params["ln2a"][l], params["ln2b"][l])
        h1 = jax.nn.relu(y @ params["w1"][l] + params["b1"][l])
        out = out + (h1 @ params["w2"][l] + params["b2"][l])

    return ln(out, params["fna"], params["fnb"])


# ------------------------------ param init -----------------------------------
def init_params(key):
    keys = jax.random.split(key, 8)

    def w(k, shape, scale=0.05):
        return (scale * jax.random.normal(k, shape)).astype(jnp.float32)

    L, D, Dff = N_LAYERS, D_MODEL, D_FF
    return {
        "ln1a": jnp.ones((L, D), jnp.float32),
        "ln1b": jnp.zeros((L, D), jnp.float32),
        "wq": w(keys[0], (L, D, D)), "bq": jnp.zeros((L, D), jnp.float32),
        "wk": w(keys[1], (L, D, D)), "bk": jnp.zeros((L, D), jnp.float32),
        "wv": w(keys[2], (L, D, D)), "bv": jnp.zeros((L, D), jnp.float32),
        "wo": w(keys[3], (L, D, D)), "bo": jnp.zeros((L, D), jnp.float32),
        "ln2a": jnp.ones((L, D), jnp.float32),
        "ln2b": jnp.zeros((L, D), jnp.float32),
        "w1": w(keys[4], (L, D, Dff)), "b1": jnp.zeros((L, Dff), jnp.float32),
        "w2": w(keys[5], (L, Dff, D)), "b2": jnp.zeros((L, D), jnp.float32),
        "fna": jnp.ones((1, D), jnp.float32),
        "fnb": jnp.zeros((1, D), jnp.float32),
    }


if __name__ == "__main__":
    key = jax.random.PRNGKey(0)
    kx, kp = jax.random.split(key)
    x = jax.random.normal(kx, (BATCH, SEQ, D_MODEL), dtype=jnp.float32)
    # mask: keep first 6 key positions for batch 0, all for batch 1
    mask = jnp.ones((BATCH, 1, SEQ), jnp.float32)
    mask = mask.at[0, 0, 6:].set(0.0)
    params = init_params(kp)

    out = encoder_forward(x, mask, params)
    out = jax.block_until_ready(out)

    ref = encoder_reference(x, mask, params)
    assert out.shape == (BATCH, SEQ, D_MODEL)
    # Tolerance 2e-3: approx EUP reciprocal (~2^-12 rel. err.) is used only in
    # the softmax denominator; LayerNorm now uses exact division.
    assert jnp.allclose(out, ref, atol=2e-3, rtol=2e-3), (
        f"max abs err {jnp.max(jnp.abs(out - ref))}")
    print("KERNEL_OK")
</pallas_src>

<mosaic_0001>
module attributes {stable_mosaic.version = 11 : i64} {
  func.func @encoder_kernel(%arg0: memref<16x32xf32, #tpu.memory_space<vmem>>, %arg1: memref<2x1x8xf32, #tpu.memory_space<vmem>>, %arg2: memref<2x32x96xf32, #tpu.memory_space<vmem>>, %arg3: memref<2x32x32xf32, #tpu.memory_space<vmem>>, %arg4: memref<2x32x64xf32, #tpu.memory_space<vmem>>, %arg5: memref<2x64x32xf32, #tpu.memory_space<vmem>>, %arg6: memref<18x128xf32, #tpu.memory_space<vmem>>, %arg7: memref<16x32xf32, #tpu.memory_space<vmem>>) attributes {dimension_semantics = [], scalar_prefetch = 0 : i64, scratch_operands = 0 : i64, tpu.core_type = #tpu.core_type<tc>} {
    %c0 = arith.constant 0 : index
    %c0_0 = arith.constant 0 : index
    %0 = vector.load %arg0[%c0, %c0_0] : memref<16x32xf32, #tpu.memory_space<vmem>>, vector<16x32xf32>
    %c0_1 = arith.constant 0 : index
    %c0_2 = arith.constant 0 : index
    %c0_3 = arith.constant 0 : index
    %1 = vector.load %arg1[%c0_1, %c0_2, %c0_3] : memref<2x1x8xf32, #tpu.memory_space<vmem>>, vector<2x1x8xf32>
    %cst = arith.constant 0.000000e+00 : f32
    %2 = vector.broadcast %cst : f32 to vector<2x1x8xf32>
    %3 = arith.cmpf oeq, %1, %2 : vector<2x1x8xf32>
    %cst_4 = arith.constant -1.000000e+09 : f32
    %cst_5 = arith.constant 0.000000e+00 : f32
    %4 = vector.broadcast %cst_4 : f32 to vector<2x1x8xf32>
    %5 = vector.broadcast %cst_5 : f32 to vector<2x1x8xf32>
    %6 = arith.select %3, %4, %5 : vector<2x1x8xi1>, vector<2x1x8xf32>
    %7 = vector.shape_cast %6 : vector<2x1x8xf32> to vector<1x2x1x8xf32>
    %8 = vector.shape_cast %7 : vector<1x2x1x8xf32> to vector<1x2x1x8xf32>
    %9 = vector.broadcast %8 : vector<1x2x1x8xf32> to vector<4x2x1x8xf32>
    %10 = vector.shape_cast %9 : vector<4x2x1x8xf32> to vector<8x1x8xf32>
    %c0_6 = arith.constant 0 : index
    %c0_7 = arith.constant 0 : index
    %11 = vector.load %arg6[%c0_6, %c0_7] : memref<18x128xf32, #tpu.memory_space<vmem>>, vector<1x32xf32>
    %c1 = arith.constant 1 : index
    %c0_8 = arith.constant 0 : index
    %12 = vector.load %arg6[%c1, %c0_8] : memref<18x128xf32, #tpu.memory_space<vmem>>, vector<1x32xf32>
    %cst_9 = arith.constant dense<0.000000e+00> : vector<16xf32>
    %13 = vector.multi_reduction <add>, %0, %cst_9 [1] : vector<16x32xf32> to vector<16xf32>
    %14 = vector.shape_cast %13 : vector<16xf32> to vector<16x1xf32>
    %cst_10 = arith.constant 3.200000e+01 : f32
    %15 = vector.broadcast %cst_10 : f32 to vector<16x1xf32>
    %16 = arith.divf %14, %15 : vector<16x1xf32>
    %17 = vector.broadcast %16 : vector<16x1xf32> to vector<16x32xf32>
    %18 = arith.subf %0, %17 : vector<16x32xf32>
    %19 = arith.mulf %18, %18 : vector<16x32xf32>
    %cst_11 = arith.constant dense<0.000000e+00> : vector<16xf32>
    %20 = vector.multi_reduction <add>, %19, %cst_11 [1] : vector<16x32xf32> to vector<16xf32>
    %21 = vector.shape_cast %20 : vector<16xf32> to vector<16x1xf32>
    %cst_12 = arith.constant 0.0322580636 : f32
    %22 = vector.broadcast %cst_12 : f32 to vector<16x1xf32>
    %23 = arith.mulf %21, %22 : vector<16x1xf32>
    %24 = vector.broadcast %16 : vector<16x1xf32> to vector<16x32xf32>
    %25 = arith.subf %0, %24 : vector<16x32xf32>
    %26 = vector.broadcast %11 : vector<1x32xf32> to vector<16x32xf32>
    %27 = arith.mulf %26, %25 : vector<16x32xf32>
    %28 = math.sqrt %23 : vector<16x1xf32>
    %cst_13 = arith.constant 9.99999997E-7 : f32
    %29 = vector.broadcast %cst_13 : f32 to vector<16x1xf32>
    %30 = arith.addf %28, %29 : vector<16x1xf32>
    %31 = vector.broadcast %30 : vector<16x1xf32> to vector<16x32xf32>
    %32 = arith.divf %27, %31 : vector<16x32xf32>
    %33 = vector.broadcast %12 : vector<1x32xf32> to vector<16x32xf32>
    %34 = arith.addf %32, %33 : vector<16x32xf32>
    %c0_14 = arith.constant 0 : index
    %c0_15 = arith.constant 0 : index
    %c0_16 = arith.constant 0 : index
    %35 = vector.load %arg2[%c0_14, %c0_15, %c0_16] : memref<2x32x96xf32, #tpu.memory_space<vmem>>, vector<1x32x96xf32>
    %36 = vector.shape_cast %35 : vector<1x32x96xf32> to vector<32x96xf32>
    %cst_17 = arith.constant dense<0.000000e+00> : vector<16x96xf32>
    %37 = tpu.matmul %34, %36, %cst_17 {dimension_numbers = #tpu.dot_dimension_numbers<[1], [0], [0], [1], [0, 0, 1, 1], [], []>} : vector<16x32xf32>, vector<32x96xf32>, vector<16x96xf32> -> vector<16x96xf32>
    %c2 = arith.constant 2 : index
    %c0_18 = arith.constant 0 : index
    %38 = vector.load %arg6[%c2, %c0_18] : memref<18x128xf32, #tpu.memory_space<vmem>>, vector<1x96xf32>
    %39 = vector.broadcast %38 : vector<1x96xf32> to vector<16x96xf32>
    %40 = arith.addf %37, %39 : vector<16x96xf32>
    %41 = vector.extract_strided_slice %40 {offsets = [0, 0], sizes = [16, 8], strides = [1, 1]} : vector<16x96xf32> to vector<16x8xf32>
    %42 = vector.extract_strided_slice %40 {offsets = [0, 8], sizes = [16, 8], strides = [1, 1]} : vector<16x96xf32> to vector<16x8xf32>
    %43 = vector.extract_strided_slice %40 {offsets = [0, 16], sizes = [16, 8], strides = [1, 1]} : vector<16x96xf32> to vector<16x8xf32>
    %44 = vector.extract_strided_slice %40 {offsets = [0, 24], sizes = [16, 8], strides = [1, 1]} : vector<16x96xf32> to vector<16x8xf32>
    %45 = vector.shape_cast %41 : vector<16x8xf32> to vector<1x16x8xf32>
    %46 = vector.shape_cast %42 : vector<16x8xf32> to vector<1x16x8xf32>
    %47 = vector.shape_cast %43 : vector<16x8xf32> to vector<1x16x8xf32>
    %48 = vector.shape_cast %44 : vector<16x8xf32> to vector<1x16x8xf32>
    %49 = tpu.concatenate %45, %46, %47, %48 in 0 : vector<1x16x8xf32>, vector<1x16x8xf32>, vector<1x16x8xf32>, vector<1x16x8xf32> -> vector<4x16x8xf32>
    %50 = vector.shape_cast %49 : vector<4x16x8xf32> to vector<8x8x8xf32>
    %51 = vector.extract_strided_slice %40 {offsets = [0, 32], sizes = [16, 8], strides = [1, 1]} : vector<16x96xf32> to vector<16x8xf32>
    %52 = vector.extract_strided_slice %40 {offsets = [0, 40], sizes = [16, 8], strides = [1, 1]} : vector<16x96xf32> to vector<16x8xf32>
    %53 = vector.extract_strided_slice %40 {offsets = [0, 48], sizes = [16, 8], strides = [1, 1]} : vector<16x96xf32> to vector<16x8xf32>
    %54 = vector.extract_strided_slice %40 {offsets = [0, 56], sizes = [16, 8], strides = [1, 1]} : vector<16x96xf32> to vector<16x8xf32>
    %55 = vector.shape_cast %51 : vector<16x8xf32> to vector<1x16x8xf32>
    %56 = vector.shape_cast %52 : vector<16x8xf32> to vector<1x16x8xf32>
    %57 = vector.shape_cast %53 : vector<16x8xf32> to vector<1x16x8xf32>
    %58 = vector.shape_cast %54 : vector<16x8xf32> to vector<1x16x8xf32>
    %59 = tpu.concatenate %55, %56, %57, %58 in 0 : vector<1x16x8xf32>, vector<1x16x8xf32>, vector<1x16x8xf32>, vector<1x16x8xf32> -> vector<4x16x8xf32>
    %60 = vector.shape_cast %59 : vector<4x16x8xf32> to vector<8x8x8xf32>
    %61 = vector.extract_strided_slice %40 {offsets = [0, 64], sizes = [16, 8], strides = [1, 1]} : vector<16x96xf32> to vector<16x8xf32>
    %62 = vector.extract_strided_slice %40 {offsets = [0, 72], sizes = [16, 8], strides = [1, 1]} : vector<16x96xf32> to vector<16x8xf32>
    %63 = vector.extract_strided_slice %40 {offsets = [0, 80], sizes = [16, 8], strides = [1, 1]} : vector<16x96xf32> to vector<16x8xf32>
    %64 = vector.extract_strided_slice %40 {offsets = [0, 88], sizes = [16, 8], strides = [1, 1]} : vector<16x96xf32> to vector<16x8xf32>
    %65 = vector.shape_cast %61 : vector<16x8xf32> to vector<1x16x8xf32>
    %66 = vector.shape_cast %62 : vector<16x8xf32> to vector<1x16x8xf32>
    %67 = vector.shape_cast %63 : vector<16x8xf32> to vector<1x16x8xf32>
    %68 = vector.shape_cast %64 : vector<16x8xf32> to vector<1x16x8xf32>
    %69 = tpu.concatenate %65, %66, %67, %68 in 0 : vector<1x16x8xf32>, vector<1x16x8xf32>, vector<1x16x8xf32>, vector<1x16x8xf32> -> vector<4x16x8xf32>
    %70 = vector.shape_cast %69 : vector<4x16x8xf32> to vector<8x8x8xf32>
    "tpu.trace_start"() <{level = 10 : i32, message = "nqd,nkd->nqk"}> : () -> ()
    %cst_19 = arith.constant dense<0.000000e+00> : vector<8x8x8xf32>
    %71 = tpu.matmul %50, %60, %cst_19 {dimension_numbers = #tpu.dot_dimension_numbers<[2], [2], [1], [1], [0, 0, 0, 1, 1, 1], [0], [0]>} : vector<8x8x8xf32>, vector<8x8x8xf32>, vector<8x8x8xf32> -> vector<8x8x8xf32>
    "tpu.trace_stop"() : () -> ()
    %cst_20 = arith.constant 0.353553385 : f32
    %72 = vector.broadcast %cst_20 : f32 to vector<8x8x8xf32>
    %73 = arith.mulf %71, %72 : vector<8x8x8xf32>
    %74 = vector.broadcast %10 : vector<8x1x8xf32> to vector<8x8x8xf32>
    %75 = arith.addf %73, %74 : vector<8x8x8xf32>
    %cst_21 = arith.constant dense<0xFF800000> : vector<8x8xf32>
    %76 = vector.multi_reduction <maximumf>, %75, %cst_21 [2] : vector<8x8x8xf32> to vector<8x8xf32>
    %77 = vector.shape_cast %76 : vector<8x8xf32> to vector<8x8x1xf32>
    %78 = vector.broadcast %77 : vector<8x8x1xf32> to vector<8x8x8xf32>
    %79 = arith.subf %75, %78 : vector<8x8x8xf32>
    %80 = math.exp %79 : vector<8x8x8xf32>
    %cst_22 = arith.constant dense<0.000000e+00> : vector<8x8xf32>
    %81 = vector.multi_reduction <add>, %80, %cst_22 [2] : vector<8x8x8xf32> to vector<8x8xf32>
    %82 = vector.shape_cast %81 : vector<8x8xf32> to vector<8x8x1xf32>
    %83 = tpu.reciprocal %82 {approx = true} : vector<8x8x1xf32> -> vector<8x8x1xf32>
    %84 = vector.broadcast %83 : vector<8x8x1xf32> to vector<8x8x8xf32>
    %85 = arith.mulf %80, %84 : vector<8x8x8xf32>
    "tpu.trace_start"() <{level = 10 : i32, message = "nqk,nkd->nqd"}> : () -> ()
    %cst_23 = arith.constant dense<0.000000e+00> : vector<8x8x8xf32>
    %86 = tpu.matmul %85, %70, %cst_23 {dimension_numbers = #tpu.dot_dimension_numbers<[2], [1], [1], [2], [0, 0, 0, 1, 1, 2], [0], [0]>} : vector<8x8x8xf32>, vector<8x8x8xf32>, vector<8x8x8xf32> -> vector<8x8x8xf32>
    "tpu.trace_stop"() : () -> ()
    %87 = vector.shape_cast %86 : vector<8x8x8xf32> to vector<4x16x8xf32>
    %88 = vector.extract_strided_slice %87 {offsets = [0, 0, 0], sizes = [1, 16, 8], strides = [1, 1, 1]} : vector<4x16x8xf32> to vector<1x16x8xf32>
    %89 = vector.shape_cast %88 : vector<1x16x8xf32> to vector<16x8xf32>
    %90 = vector.extract_strided_slice %87 {offsets = [1, 0, 0], sizes = [1, 16, 8], strides = [1, 1, 1]} : vector<4x16x8xf32> to vector<1x16x8xf32>
    %91 = vector.shape_cast %90 : vector<1x16x8xf32> to vector<16x8xf32>
    %92 = vector.extract_strided_slice %87 {offsets = [2, 0, 0], sizes = [1, 16, 8], strides = [1, 1, 1]} : vector<4x16x8xf32> to vector<1x16x8xf32>
    %93 = vector.shape_cast %92 : vector<1x16x8xf32> to vector<16x8xf32>
    %94 = vector.extract_strided_slice %87 {offsets = [3, 0, 0], sizes = [1, 16, 8], strides = [1, 1, 1]} : vector<4x16x8xf32> to vector<1x16x8xf32>
    %95 = vector.shape_cast %94 : vector<1x16x8xf32> to vector<16x8xf32>
    %96 = tpu.concatenate %89, %91, %93, %95 in 1 : vector<16x8xf32>, vector<16x8xf32>, vector<16x8xf32>, vector<16x8xf32> -> vector<16x32xf32>
    %c0_24 = arith.constant 0 : index
    %c0_25 = arith.constant 0 : index
    %c0_26 = arith.constant 0 : index
    %97 = vector.load %arg3[%c0_24, %c0_25, %c0_26] : memref<2x32x32xf32, #tpu.memory_space<vmem>>, vector<1x32x32xf32>
    %98 = vector.shape_cast %97 : vector<1x32x32xf32> to vector<32x32xf32>
    %cst_27 = arith.constant dense<0.000000e+00> : vector<16x32xf32>
    %99 = tpu.matmul %96, %98, %cst_27 {dimension_numbers = #tpu.dot_dimension_numbers<[1], [0], [0], [1], [0, 0, 1, 1], [], []>} : vector<16x32xf32>, vector<32x32xf32>, vector<16x32xf32> -> vector<16x32xf32>
    %c3 = arith.constant 3 : index
    %c0_28 = arith.constant 0 : index
    %100 = vector.load %arg6[%c3, %c0_28] : memref<18x128xf32, #tpu.memory_space<vmem>>, vector<1x32xf32>
    %101 = vector.broadcast %100 : vector<1x32xf32> to vector<16x32xf32>
    %102 = arith.addf %99, %101 : vector<16x32xf32>
    %103 = arith.addf %0, %102 : vector<16x32xf32>
    %c4 = arith.constant 4 : index
    %c0_29 = arith.constant 0 : index
    %104 = vector.load %arg6[%c4, %c0_29] : memref<18x128xf32, #tpu.memory_space<vmem>>, vector<1x32xf32>
    %c5 = arith.constant 5 : index
    %c0_30 = arith.constant 0 : index
    %105 = vector.load %arg6[%c5, %c0_30] : memref<18x128xf32, #tpu.memory_space<vmem>>, vector<1x32xf32>
    %cst_31 = arith.constant dense<0.000000e+00> : vector<16xf32>
    %106 = vector.multi_reduction <add>, %103, %cst_31 [1] : vector<16x32xf32> to vector<16xf32>
    %107 = vector.shape_cast %106 : vector<16xf32> to vector<16x1xf32>
    %cst_32 = arith.constant 3.200000e+01 : f32
    %108 = vector.broadcast %cst_32 : f32 to vector<16x1xf32>
    %109 = arith.divf %107, %108 : vector<16x1xf32>
    %110 = vector.broadcast %109 : vector<16x1xf32> to vector<16x32xf32>
    %111 = arith.subf %103, %110 : vector<16x32xf32>
    %112 = arith.mulf %111, %111 : vector<16x32xf32>
    %cst_33 = arith.constant dense<0.000000e+00> : vector<16xf32>
    %113 = vector.multi_reduction <add>, %112, %cst_33 [1] : vector<16x32xf32> to vector<16xf32>
    %114 = vector.shape_cast %113 : vector<16xf32> to vector<16x1xf32>
    %cst_34 = arith.constant 0.0322580636 : f32
    %115 = vector.broadcast %cst_34 : f32 to vector<16x1xf32>
    %116 = arith.mulf %114, %115 : vector<16x1xf32>
    %117 = vector.broadcast %109 : vector<16x1xf32> to vector<16x32xf32>
    %118 = arith.subf %103, %117 : vector<16x32xf32>
    %119 = vector.broadcast %104 : vector<1x32xf32> to vector<16x32xf32>
    %120 = arith.mulf %119, %118 : vector<16x32xf32>
    %121 = math.sqrt %116 : vector<16x1xf32>
    %cst_35 = arith.constant 9.99999997E-7 : f32
    %122 = vector.broadcast %cst_35 : f32 to vector<16x1xf32>
    %123 = arith.addf %121, %122 : vector<16x1xf32>
    %124 = vector.broadcast %123 : vector<16x1xf32> to vector<16x32xf32>
    %125 = arith.divf %120, %124 : vector<16x32xf32>
    %126 = vector.broadcast %105 : vector<1x32xf32> to vector<16x32xf32>
    %127 = arith.addf %125, %126 : vector<16x32xf32>
    %c0_36 = arith.constant 0 : index
    %c0_37 = arith.constant 0 : index
    %c0_38 = arith.constant 0 : index
    %128 = vector.load %arg4[%c0_36, %c0_37, %c0_38] : memref<2x32x64xf32, #tpu.memory_space<vmem>>, vector<1x32x64xf32>
    %129 = vector.shape_cast %128 : vector<1x32x64xf32> to vector<32x64xf32>
    %cst_39 = arith.constant dense<0.000000e+00> : vector<16x64xf32>
    %130 = tpu.matmul %127, %129, %cst_39 {dimension_numbers = #tpu.dot_dimension_numbers<[1], [0], [0], [1], [0, 0, 1, 1], [], []>} : vector<16x32xf32>, vector<32x64xf32>, vector<16x64xf32> -> vector<16x64xf32>
    %c6 = arith.constant 6 : index
    %c0_40 = arith.constant 0 : index
    %131 = vector.load %arg6[%c6, %c0_40] : memref<18x128xf32, #tpu.memory_space<vmem>>, vector<1x64xf32>
    %132 = vector.broadcast %131 : vector<1x64xf32> to vector<16x64xf32>
    %133 = arith.addf %130, %132 : vector<16x64xf32>
    %cst_41 = arith.constant 0.000000e+00 : f32
    %134 = vector.broadcast %cst_41 : f32 to vector<16x64xf32>
    %135 = arith.maximumf %133, %134 : vector<16x64xf32>
    %c0_42 = arith.constant 0 : index
    %c0_43 = arith.constant 0 : index
    %c0_44 = arith.constant 0 : index
    %136 = vector.load %arg5[%c0_42, %c0_43, %c0_44] : memref<2x64x32xf32, #tpu.memory_space<vmem>>, vector<1x64x32xf32>
    %137 = vector.shape_cast %136 : vector<1x64x32xf32> to vector<64x32xf32>
    %cst_45 = arith.constant dense<0.000000e+00> : vector<16x32xf32>
    %138 = tpu.matmul %135, %137, %cst_45 {dimension_numbers = #tpu.dot_dimension_numbers<[1], [0], [0], [1], [0, 0, 1, 1], [], []>} : vector<16x64xf32>, vector<64x32xf32>, vector<16x32xf32> -> vector<16x32xf32>
    %c7 = arith.constant 7 : index
    %c0_46 = arith.constant 0 : index
    %139 = vector.load %arg6[%c7, %c0_46] : memref<18x128xf32, #tpu.memory_space<vmem>>, vector<1x32xf32>
    %140 = vector.broadcast %139 : vector<1x32xf32> to vector<16x32xf32>
    %141 = arith.addf %138, %140 : vector<16x32xf32>
    %142 = arith.addf %103, %141 : vector<16x32xf32>
    %c8 = arith.constant 8 : index
    %c0_47 = arith.constant 0 : index
    %143 = vector.load %arg6[%c8, %c0_47] : memref<18x128xf32, #tpu.memory_space<vmem>>, vector<1x32xf32>
    %c9 = arith.constant 9 : index
    %c0_48 = arith.constant 0 : index
    %144 = vector.load %arg6[%c9, %c0_48] : memref<18x128xf32, #tpu.memory_space<vmem>>, vector<1x32xf32>
    %cst_49 = arith.constant dense<0.000000e+00> : vector<16xf32>
    %145 = vector.multi_reduction <add>, %142, %cst_49 [1] : vector<16x32xf32> to vector<16xf32>
    %146 = vector.shape_cast %145 : vector<16xf32> to vector<16x1xf32>
    %cst_50 = arith.constant 3.200000e+01 : f32
    %147 = vector.broadcast %cst_50 : f32 to vector<16x1xf32>
    %148 = arith.divf %146, %147 : vector<16x1xf32>
    %149 = vector.broadcast %148 : vector<16x1xf32> to vector<16x32xf32>
    %150 = arith.subf %142, %149 : vector<16x32xf32>
    %151 = arith.mulf %150, %150 : vector<16x32xf32>
    %cst_51 = arith.constant dense<0.000000e+00> : vector<16xf32>
    %152 = vector.multi_reduction <add>, %151, %cst_51 [1] : vector<16x32xf32> to vector<16xf32>
    %153 = vector.shape_cast %152 : vector<16xf32> to vector<16x1xf32>
    %cst_52 = arith.constant 0.0322580636 : f32
    %154 = vector.broadcast %cst_52 : f32 to vector<16x1xf32>
    %155 = arith.mulf %153, %154 : vector<16x1xf32>
    %156 = vector.broadcast %148 : vector<16x1xf32> to vector<16x32xf32>
    %157 = arith.subf %142, %156 : vector<16x32xf32>
    %158 = vector.broadcast %143 : vector<1x32xf32> to vector<16x32xf32>
    %159 = arith.mulf %158, %157 : vector<16x32xf32>
    %160 = math.sqrt %155 : vector<16x1xf32>
    %cst_53 = arith.constant 9.99999997E-7 : f32
    %161 = vector.broadcast %cst_53 : f32 to vector<16x1xf32>
    %162 = arith.addf %160, %161 : vector<16x1xf32>
    %163 = vector.broadcast %162 : vector<16x1xf32> to vector<16x32xf32>
    %164 = arith.divf %159, %163 : vector<16x32xf32>
    %165 = vector.broadcast %144 : vector<1x32xf32> to vector<16x32xf32>
    %166 = arith.addf %164, %165 : vector<16x32xf32>
    %c1_54 = arith.constant 1 : index
    %c0_55 = arith.constant 0 : index
    %c0_56 = arith.constant 0 : index
    %167 = vector.load %arg2[%c1_54, %c0_55, %c0_56] : memref<2x32x96xf32, #tpu.memory_space<vmem>>, vector<1x32x96xf32>
    %168 = vector.shape_cast %167 : vector<1x32x96xf32> to vector<32x96xf32>
    %cst_57 = arith.constant dense<0.000000e+00> : vector<16x96xf32>
    %169 = tpu.matmul %166, %168, %cst_57 {dimension_numbers = #tpu.dot_dimension_numbers<[1], [0], [0], [1], [0, 0, 1, 1], [], []>} : vector<16x32xf32>, vector<32x96xf32>, vector<16x96xf32> -> vector<16x96xf32>
    %c10 = arith.constant 10 : index
    %c0_58 = arith.constant 0 : index
    %170 = vector.load %arg6[%c10, %c0_58] : memref<18x128xf32, #tpu.memory_space<vmem>>, vector<1x96xf32>
    %171 = vector.broadcast %170 : vector<1x96xf32> to vector<16x96xf32>
    %172 = arith.addf %169, %171 : vector<16x96xf32>
    %173 = vector.extract_strided_slice %172 {offsets = [0, 0], sizes = [16, 8], strides = [1, 1]} : vector<16x96xf32> to vector<16x8xf32>
    %174 = vector.extract_strided_slice %172 {offsets = [0, 8], sizes = [16, 8], strides = [1, 1]} : vector<16x96xf32> to vector<16x8xf32>
    %175 = vector.extract_strided_slice %172 {offsets = [0, 16], sizes = [16, 8], strides = [1, 1]} : vector<16x96xf32> to vector<16x8xf32>
    %176 = vector.extract_strided_slice %172 {offsets = [0, 24], sizes = [16, 8], strides = [1, 1]} : vector<16x96xf32> to vector<16x8xf32>
    %177 = vector.shape_cast %173 : vector<16x8xf32> to vector<1x16x8xf32>
    %178 = vector.shape_cast %174 : vector<16x8xf32> to vector<1x16x8xf32>
    %179 = vector.shape_cast %175 : vector<16x8xf32> to vector<1x16x8xf32>
    %180 = vector.shape_cast %176 : vector<16x8xf32> to vector<1x16x8xf32>
    %181 = tpu.concatenate %177, %178, %179, %180 in 0 : vector<1x16x8xf32>, vector<1x16x8xf32>, vector<1x16x8xf32>, vector<1x16x8xf32> -> vector<4x16x8xf32>
    %182 = vector.shape_cast %181 : vector<4x16x8xf32> to vector<8x8x8xf32>
    %183 = vector.extract_strided_slice %172 {offsets = [0, 32], sizes = [16, 8], strides = [1, 1]} : vector<16x96xf32> to vector<16x8xf32>
    %184 = vector.extract_strided_slice %172 {offsets = [0, 40], sizes = [16, 8], strides = [1, 1]} : vector<16x96xf32> to vector<16x8xf32>
    %185 = vector.extract_strided_slice %172 {offsets = [0, 48], sizes = [16, 8], strides = [1, 1]} : vector<16x96xf32> to vector<16x8xf32>
    %186 = vector.extract_strided_slice %172 {offsets = [0, 56], sizes = [16, 8], strides = [1, 1]} : vector<16x96xf32> to vector<16x8xf32>
    %187 = vector.shape_cast %183 : vector<16x8xf32> to vector<1x16x8xf32>
    %188 = vector.shape_cast %184 : vector<16x8xf32> to vector<1x16x8xf32>
    %189 = vector.shape_cast %185 : vector<16x8xf32> to vector<1x16x8xf32>
    %190 = vector.shape_cast %186 : vector<16x8xf32> to vector<1x16x8xf32>
    %191 = tpu.concatenate %187, %188, %189, %190 in 0 : vector<1x16x8xf32>, vector<1x16x8xf32>, vector<1x16x8xf32>, vector<1x16x8xf32> -> vector<4x16x8xf32>
    %192 = vector.shape_cast %191 : vector<4x16x8xf32> to vector<8x8x8xf32>
    %193 = vector.extract_strided_slice %172 {offsets = [0, 64], sizes = [16, 8], strides = [1, 1]} : vector<16x96xf32> to vector<16x8xf32>
    %194 = vector.extract_strided_slice %172 {offsets = [0, 72], sizes = [16, 8], strides = [1, 1]} : vector<16x96xf32> to vector<16x8xf32>
    %195 = vector.extract_strided_slice %172 {offsets = [0, 80], sizes = [16, 8], strides = [1, 1]} : vector<16x96xf32> to vector<16x8xf32>
    %196 = vector.extract_strided_slice %172 {offsets = [0, 88], sizes = [16, 8], strides = [1, 1]} : vector<16x96xf32> to vector<16x8xf32>
    %197 = vector.shape_cast %193 : vector<16x8xf32> to vector<1x16x8xf32>
    %198 = vector.shape_cast %194 : vector<16x8xf32> to vector<1x16x8xf32>
    %199 = vector.shape_cast %195 : vector<16x8xf32> to vector<1x16x8xf32>
    %200 = vector.shape_cast %196 : vector<16x8xf32> to vector<1x16x8xf32>
    %201 = tpu.concatenate %197, %198, %199, %200 in 0 : vector<1x16x8xf32>, vector<1x16x8xf32>, vector<1x16x8xf32>, vector<1x16x8xf32> -> vector<4x16x8xf32>
    %202 = vector.shape_cast %201 : vector<4x16x8xf32> to vector<8x8x8xf32>
    "tpu.trace_start"() <{level = 10 : i32, message = "nqd,nkd->nqk"}> : () -> ()
    %cst_59 = arith.constant dense<0.000000e+00> : vector<8x8x8xf32>
    %203 = tpu.matmul %182, %192, %cst_59 {dimension_numbers = #tpu.dot_dimension_numbers<[2], [2], [1], [1], [0, 0, 0, 1, 1, 1], [0], [0]>} : vector<8x8x8xf32>, vector<8x8x8xf32>, vector<8x8x8xf32> -> vector<8x8x8xf32>
    "tpu.trace_stop"() : () -> ()
    %cst_60 = arith.constant 0.353553385 : f32
    %204 = vector.broadcast %cst_60 : f32 to vector<8x8x8xf32>
    %205 = arith.mulf %203, %204 : vector<8x8x8xf32>
    %206 = vector.broadcast %10 : vector<8x1x8xf32> to vector<8x8x8xf32>
    %207 = arith.addf %205, %206 : vector<8x8x8xf32>
    %cst_61 = arith.constant dense<0xFF800000> : vector<8x8xf32>
    %208 = vector.multi_reduction <maximumf>, %207, %cst_61 [2] : vector<8x8x8xf32> to vector<8x8xf32>
    %209 = vector.shape_cast %208 : vector<8x8xf32> to vector<8x8x1xf32>
    %210 = vector.broadcast %209 : vector<8x8x1xf32> to vector<8x8x8xf32>
    %211 = arith.subf %207, %210 : vector<8x8x8xf32>
    %212 = math.exp %211 : vector<8x8x8xf32>
    %cst_62 = arith.constant dense<0.000000e+00> : vector<8x8xf32>
    %213 = vector.multi_reduction <add>, %212, %cst_62 [2] : vector<8x8x8xf32> to vector<8x8xf32>
    %214 = vector.shape_cast %213 : vector<8x8xf32> to vector<8x8x1xf32>
    %215 = tpu.reciprocal %214 {approx = true} : vector<8x8x1xf32> -> vector<8x8x1xf32>
    %216 = vector.broadcast %215 : vector<8x8x1xf32> to vector<8x8x8xf32>
    %217 = arith.mulf %212, %216 : vector<8x8x8xf32>
    "tpu.trace_start"() <{level = 10 : i32, message = "nqk,nkd->nqd"}> : () -> ()
    %cst_63 = arith.constant dense<0.000000e+00> : vector<8x8x8xf32>
    %218 = tpu.matmul %217, %202, %cst_63 {dimension_numbers = #tpu.dot_dimension_numbers<[2], [1], [1], [2], [0, 0, 0, 1, 1, 2], [0], [0]>} : vector<8x8x8xf32>, vector<8x8x8xf32>, vector<8x8x8xf32> -> vector<8x8x8xf32>
    "tpu.trace_stop"() : () -> ()
    %219 = vector.shape_cast %218 : vector<8x8x8xf32> to vector<4x16x8xf32>
    %220 = vector.extract_strided_slice %219 {offsets = [0, 0, 0], sizes = [1, 16, 8], strides = [1, 1, 1]} : vector<4x16x8xf32> to vector<1x16x8xf32>
    %221 = vector.shape_cast %220 : vector<1x16x8xf32> to vector<16x8xf32>
    %222 = vector.extract_strided_slice %219 {offsets = [1, 0, 0], sizes = [1, 16, 8], strides = [1, 1, 1]} : vector<4x16x8xf32> to vector<1x16x8xf32>
    %223 = vector.shape_cast %222 : vector<1x16x8xf32> to vector<16x8xf32>
    %224 = vector.extract_strided_slice %219 {offsets = [2, 0, 0], sizes = [1, 16, 8], strides = [1, 1, 1]} : vector<4x16x8xf32> to vector<1x16x8xf32>
    %225 = vector.shape_cast %224 : vector<1x16x8xf32> to vector<16x8xf32>
    %226 = vector.extract_strided_slice %219 {offsets = [3, 0, 0], sizes = [1, 16, 8], strides = [1, 1, 1]} : vector<4x16x8xf32> to vector<1x16x8xf32>
    %227 = vector.shape_cast %226 : vector<1x16x8xf32> to vector<16x8xf32>
    %228 = tpu.concatenate %221, %223, %225, %227 in 1 : vector<16x8xf32>, vector<16x8xf32>, vector<16x8xf32>, vector<16x8xf32> -> vector<16x32xf32>
    %c1_64 = arith.constant 1 : index
    %c0_65 = arith.constant 0 : index
    %c0_66 = arith.constant 0 : index
    %229 = vector.load %arg3[%c1_64, %c0_65, %c0_66] : memref<2x32x32xf32, #tpu.memory_space<vmem>>, vector<1x32x32xf32>
    %230 = vector.shape_cast %229 : vector<1x32x32xf32> to vector<32x32xf32>
    %cst_67 = arith.constant dense<0.000000e+00> : vector<16x32xf32>
    %231 = tpu.matmul %228, %230, %cst_67 {dimension_numbers = #tpu.dot_dimension_numbers<[1], [0], [0], [1], [0, 0, 1, 1], [], []>} : vector<16x32xf32>, vector<32x32xf32>, vector<16x32xf32> -> vector<16x32xf32>
    %c11 = arith.constant 11 : index
    %c0_68 = arith.constant 0 : index
    %232 = vector.load %arg6[%c11, %c0_68] : memref<18x128xf32, #tpu.memory_space<vmem>>, vector<1x32xf32>
    %233 = vector.broadcast %232 : vector<1x32xf32> to vector<16x32xf32>
    %234 = arith.addf %231, %233 : vector<16x32xf32>
    %235 = arith.addf %142, %234 : vector<16x32xf32>
    %c12 = arith.constant 12 : index
    %c0_69 = arith.constant 0 : index
    %236 = vector.load %arg6[%c12, %c0_69] : memref<18x128xf32, #tpu.memory_space<vmem>>, vector<1x32xf32>
    %c13 = arith.constant 13 : index
    %c0_70 = arith.constant 0 : index
    %237 = vector.load %arg6[%c13, %c0_70] : memref<18x128xf32, #tpu.memory_space<vmem>>, vector<1x32xf32>
    %cst_71 = arith.constant dense<0.000000e+00> : vector<16xf32>
    %238 = vector.multi_reduction <add>, %235, %cst_71 [1] : vector<16x32xf32> to vector<16xf32>
    %239 = vector.shape_cast %238 : vector<16xf32> to vector<16x1xf32>
    %cst_72 = arith.constant 3.200000e+01 : f32
    %240 = vector.broadcast %cst_72 : f32 to vector<16x1xf32>
    %241 = arith.divf %239, %240 : vector<16x1xf32>
    %242 = vector.broadcast %241 : vector<16x1xf32> to vector<16x32xf32>
    %243 = arith.subf %235, %242 : vector<16x32xf32>
    %244 = arith.mulf %243, %243 : vector<16x32xf32>
    %cst_73 = arith.constant dense<0.000000e+00> : vector<16xf32>
    %245 = vector.multi_reduction <add>, %244, %cst_73 [1] : vector<16x32xf32> to vector<16xf32>
    %246 = vector.shape_cast %245 : vector<16xf32> to vector<16x1xf32>
    %cst_74 = arith.constant 0.0322580636 : f32
    %247 = vector.broadcast %cst_74 : f32 to vector<16x1xf32>
    %248 = arith.mulf %246, %247 : vector<16x1xf32>
    %249 = vector.broadcast %241 : vector<16x1xf32> to vector<16x32xf32>
    %250 = arith.subf %235, %249 : vector<16x32xf32>
    %251 = vector.broadcast %236 : vector<1x32xf32> to vector<16x32xf32>
    %252 = arith.mulf %251, %250 : vector<16x32xf32>
    %253 = math.sqrt %248 : vector<16x1xf32>
    %cst_75 = arith.constant 9.99999997E-7 : f32
    %254 = vector.broadcast %cst_75 : f32 to vector<16x1xf32>
    %255 = arith.addf %253, %254 : vector<16x1xf32>
    %256 = vector.broadcast %255 : vector<16x1xf32> to vector<16x32xf32>
    %257 = arith.divf %252, %256 : vector<16x32xf32>
    %258 = vector.broadcast %237 : vector<1x32xf32> to vector<16x32xf32>
    %259 = arith.addf %257, %258 : vector<16x32xf32>
    %c1_76 = arith.constant 1 : index
    %c0_77 = arith.constant 0 : index
    %c0_78 = arith.constant 0 : index
    %260 = vector.load %arg4[%c1_76, %c0_77, %c0_78] : memref<2x32x64xf32, #tpu.memory_space<vmem>>, vector<1x32x64xf32>
    %261 = vector.shape_cast %260 : vector<1x32x64xf32> to vector<32x64xf32>
    %cst_79 = arith.constant dense<0.000000e+00> : vector<16x64xf32>
    %262 = tpu.matmul %259, %261, %cst_79 {dimension_numbers = #tpu.dot_dimension_numbers<[1], [0], [0], [1], [0, 0, 1, 1], [], []>} : vector<16x32xf32>, vector<32x64xf32>, vector<16x64xf32> -> vector<16x64xf32>
    %c14 = arith.constant 14 : index
    %c0_80 = arith.constant 0 : index
    %263 = vector.load %arg6[%c14, %c0_80] : memref<18x128xf32, #tpu.memory_space<vmem>>, vector<1x64xf32>
    %264 = vector.broadcast %263 : vector<1x64xf32> to vector<16x64xf32>
    %265 = arith.addf %262, %264 : vector<16x64xf32>
    %cst_81 = arith.constant 0.000000e+00 : f32
    %266 = vector.broadcast %cst_81 : f32 to vector<16x64xf32>
    %267 = arith.maximumf %265, %266 : vector<16x64xf32>
    %c1_82 = arith.constant 1 : index
    %c0_83 = arith.constant 0 : index
    %c0_84 = arith.constant 0 : index
    %268 = vector.load %arg5[%c1_82, %c0_83, %c0_84] : memref<2x64x32xf32, #tpu.memory_space<vmem>>, vector<1x64x32xf32>
    %269 = vector.shape_cast %268 : vector<1x64x32xf32> to vector<64x32xf32>
    %cst_85 = arith.constant dense<0.000000e+00> : vector<16x32xf32>
    %270 = tpu.matmul %267, %269, %cst_85 {dimension_numbers = #tpu.dot_dimension_numbers<[1], [0], [0], [1], [0, 0, 1, 1], [], []>} : vector<16x64xf32>, vector<64x32xf32>, vector<16x32xf32> -> vector<16x32xf32>
    %c15 = arith.constant 15 : index
    %c0_86 = arith.constant 0 : index
    %271 = vector.load %arg6[%c15, %c0_86] : memref<18x128xf32, #tpu.memory_space<vmem>>, vector<1x32xf32>
    %272 = vector.broadcast %271 : vector<1x32xf32> to vector<16x32xf32>
    %273 = arith.addf %270, %272 : vector<16x32xf32>
    %274 = arith.addf %235, %273 : vector<16x32xf32>
    %c16 = arith.constant 16 : index
    %c0_87 = arith.constant 0 : index
    %275 = vector.load %arg6[%c16, %c0_87] : memref<18x128xf32, #tpu.memory_space<vmem>>, vector<1x32xf32>
    %c17 = arith.constant 17 : index
    %c0_88 = arith.constant 0 : index
    %276 = vector.load %arg6[%c17, %c0_88] : memref<18x128xf32, #tpu.memory_space<vmem>>, vector<1x32xf32>
    %cst_89 = arith.constant dense<0.000000e+00> : vector<16xf32>
    %277 = vector.multi_reduction <add>, %274, %cst_89 [1] : vector<16x32xf32> to vector<16xf32>
    %278 = vector.shape_cast %277 : vector<16xf32> to vector<16x1xf32>
    %cst_90 = arith.constant 3.200000e+01 : f32
    %279 = vector.broadcast %cst_90 : f32 to vector<16x1xf32>
    %280 = arith.divf %278, %279 : vector<16x1xf32>
    %281 = vector.broadcast %280 : vector<16x1xf32> to vector<16x32xf32>
    %282 = arith.subf %274, %281 : vector<16x32xf32>
    %283 = arith.mulf %282, %282 : vector<16x32xf32>
    %cst_91 = arith.constant dense<0.000000e+00> : vector<16xf32>
    %284 = vector.multi_reduction <add>, %283, %cst_91 [1] : vector<16x32xf32> to vector<16xf32>
    %285 = vector.shape_cast %284 : vector<16xf32> to vector<16x1xf32>
    %cst_92 = arith.constant 0.0322580636 : f32
    %286 = vector.broadcast %cst_92 : f32 to vector<16x1xf32>
    %287 = arith.mulf %285, %286 : vector<16x1xf32>
    %288 = vector.broadcast %280 : vector<16x1xf32> to vector<16x32xf32>
    %289 = arith.subf %274, %288 : vector<16x32xf32>
    %290 = vector.broadcast %275 : vector<1x32xf32> to vector<16x32xf32>
    %291 = arith.mulf %290, %289 : vector<16x32xf32>
    %292 = math.sqrt %287 : vector<16x1xf32>
    %cst_93 = arith.constant 9.99999997E-7 : f32
    %293 = vector.broadcast %cst_93 : f32 to vector<16x1xf32>
    %294 = arith.addf %292, %293 : vector<16x1xf32>
    %295 = vector.broadcast %294 : vector<16x1xf32> to vector<16x32xf32>
    %296 = arith.divf %291, %295 : vector<16x32xf32>
    %297 = vector.broadcast %276 : vector<1x32xf32> to vector<16x32xf32>
    %298 = arith.addf %296, %297 : vector<16x32xf32>
    %c0_94 = arith.constant 0 : index
    %c0_95 = arith.constant 0 : index
    %299 = vector.load %arg7[%c0_94, %c0_95] : memref<16x32xf32, #tpu.memory_space<vmem>>, vector<16x32xf32>
    tpu.vector_store %arg7[%c0_94, %c0_95], %298 {strides = array<i32>} : memref<16x32xf32, #tpu.memory_space<vmem>>, vector<16x32xf32>,
    return
  }
}

</mosaic_0001>

<bundles_post_ra>
// kernel: tpu_custom_call.1
= control target key start
LH: loop header
LB: loop body
LE: loop exit
PB: predicated region body
PF: predicated region fallthrough
CT: control target
= control target key end

     0   :  { %12 = vsyncpa [#allocation3], 0  ;;  %s5292_s0 = inlined_call_operand.hbm [shape: f32[16,32], index: 0, kind: input, shape index: {}]   ;;  %s5293_s1 = inlined_call_operand.vmem [shape: f32[2,1,8], index: 1, kind: input, shape index: {}]   ;;  %s5294_s2 = inlined_call_operand.vmem [shape: f32[2,32,96], index: 2, kind: input, shape index: {}]   ;;  %s5295_s3 = inlined_call_operand.vmem [shape: f32[2,32,32], index: 3, kind: input, shape index: {}]   ;;  %s5296_s4 = inlined_call_operand.vmem [shape: f32[2,32,64], index: 4, kind: input, shape index: {}]   ;;  %s5297_s5 = inlined_call_operand.vmem [shape: f32[2,64,32], index: 5, kind: input, shape index: {}]   ;;  %s5298_s6 = inlined_call_operand.hbm [shape: f32[18,128], index: 6, kind: input, shape index: {}]   ;;  %s5299_s7 = inlined_call_operand.hbm [shape: f32[16,32], index: 7, kind: output, shape index: {}]  }
   0x1   :  { %13 = vsyncpa [#allocation6], 0 }
   0x2   :  { %14 = vsyncpa [#allocation4], 0  ;;  %s4599_s24 = smov [#allocation2]   ;;  %s4527_s28 = scalar_lea.hbm %s5292_s0, 256 }
   0x3   :  { %s20_s25 = sshll.u32 %s4599_s24, 4  ;;  %p4528_p0 = scmp.ne.s32.totalorder %s5292_s0, %s4527_s28  ;;  %s21_s25 = int_to_ptr.vmem [resolvable:$true] %s20_s25 }
   0x4   :  { %p4531_p1 = scmp.lt.u32.totalorder %s4527_s28, %s5292_s0 }
   0x6   :  { %p4533_p2 = pnand %p4531_p1, %p4528_p0 }
   0x8   :  { %4536 = shalt.err (!%p4533_p2)
}
   0x9   :  { %s4537_s10 = scalar_lea.vmem %s21_s25, 256  ;;  %p4542_p4 = scmp.lt.s32.totalorder %s21_s25, %s21_s25 }
   0xa   :  { %p4538_p3 = scmp.ne.s32.totalorder %s21_s25, %s4537_s10  ;;  %p4543_p5 = scmp.lt.s32.totalorder %s4537_s10, %s4537_s10 }
   0xc   :  { %p4544_p6 = por %p4543_p5, %p4542_p4 }
   0xe   :  { %p4545_p7 = pnand %p4544_p6, %p4538_p3 }
  0x10   :  { %4548 = shalt.err (!%p4545_p7)
}
  0x11   :  { %s4600_s11 = smov 128   ;;  %s4601_s12 = smov 8  }
  0x12   :  { %26 = dma.hbm_to_vmem [thread:$0]  %s5292_s0, 256, %s21_s25, [#allocation3], %s4600_s11, %s4600_s11, %s4601_s12  }
  0x13   :  { %s4602_s15 = smov [#allocation5]   ;;  %s4549_s19 = scalar_lea.hbm %s5298_s6, 384 }
  0x14   :  { %s42_s16 = sshll.u32 %s4602_s15, 4  ;;  %p4550_p8 = scmp.ne.s32.totalorder %s5298_s6, %s4549_s19  ;;  %s43_s16 = int_to_ptr.vmem [resolvable:$true] %s42_s16 }
  0x15   :  { %p4553_p9 = scmp.lt.u32.totalorder %s4549_s19, %s5298_s6 }
  0x17   :  { %p4555_p10 = pnand %p4553_p9, %p4550_p8 }
  0x19   :  { %4558 = shalt.err (!%p4555_p10)
}
  0x1a   :  { %s4559_s24 = scalar_lea.vmem %s43_s16, 384  ;;  %p4564_p12 = scmp.lt.s32.totalorder %s43_s16, %s43_s16 }
  0x1b   :  { %p4560_p11 = scmp.ne.s32.totalorder %s43_s16, %s4559_s24  ;;  %p4565_p13 = scmp.lt.s32.totalorder %s4559_s24, %s4559_s24 }
  0x1d   :  { %p4566_p0 = por %p4565_p13, %p4564_p12 }
  0x1f   :  { %p4567_p1 = pnand %p4566_p0, %p4560_p11 }
  0x21   :  { %4570 = shalt.err (!%p4567_p1)
}
  0x22   :  { %48 = dma.hbm_to_vmem [thread:$0]  %s5298_s6, 384, %s43_s16, [#allocation6], %s4600_s11, %s4600_s11, %s4601_s12  }
  0x23   :  { %4593 = dma.done.wait [#allocation3], 256  }
  0x24   :  { %4594 = vsyncadd [#allocation3], 4294967040 }
  0x25   :  { %4595 = dma.done.wait [#allocation6], 384  }
  0x26   :  { %4596 = vsyncadd [#allocation6], 4294966912  ;;  %vm65_vm0 = vcmask 261120   ;;  %v4683_v0 = vld [vmem:[#allocation2] sm:$0xff]  ;;  %v4685_v1 = vld [vmem:[#allocation2 + $0x8] sm:$0xff]  ;;  %v4603_v47 = vmov 0.0  }
  0x27   :  { %v66_v2 = vsel %vm65_vm0, %v4683_v0, 0.0  ;;  %v69_v3 = vsel %vm65_vm0, %v4685_v1, 0.0  ;;  %v119_v14 = vld [vmem:[%s5294_s2] sm:$0xff]  ;;  %v120_v15 = vld [vmem:[%s5294_s2 + $0x8] sm:$0xff]  ;;  %v121_v16 = vld [vmem:[%s5294_s2 + $0x10] sm:$0xff]  ;;  %4086 = vmatprep.subr.mxu0 %v4603_v47  ;;  %vm4604_vm5 = vmmov 0  }
  0x28   :  { %67 = vadd.xlane.f32.xlu0 %v66_v2  ;;  %v4329_v17 = vpack.c.bf16 %v120_v15, %v119_v14  ;;  %v122_v18 = vld [vmem:[%s5294_s2 + $0x18] sm:$0xff]  ;;  %v3843_v36 = vld [vmem:[#allocation5] ss:$0 sm:$0xff]  ;;  %v3844_v39 = vld [vmem:[#allocation5 + $0x1] ss:$0 sm:$0xff]  ;;  %4088 = vmatprep.mubr.msk.f32.mxu0 %vm4604_vm5, %v4603_v47  ;;  %s4605_s10 = smov 120  }
  0x29   :  { %v4333_v19 = vpack.c.bf16 %v122_v18, %v121_v16  ;;  %v3845_v46 = vld [vmem:[#allocation5 + $0x2] ss:$0 sm:$0xff]  ;;  %s4606_s13 = smov 112   ;;  %s4607_s14 = smov 104   ;;  %vm225_vm6 = vcmask 64512   ;;  %vm1582_vm9 = vcmask 130048  }
  0x2a   :  { %4330 = vmatprep.subr.bf16.mxu1 %v4329_v17  ;;  %s4608_s15 = smov 96   ;;  %s4610_s26 = smov 16   ;;  %vm1585_vm10 = vcmask 195584   ;;  %vm1839_vm15 = vcmask 523264  }
  0x2b   :  { %4332 = vmatpush3.bf16.msra.mxu1 %v4329_v17  ;;  %s4611_s27 = smov 24  }
  0x2c   :  { %70 = vadd.xlane.f32.xlu0 %v69_v3  ;;  %4334 = vmatprep.subr.bf16.mxu1 %v4333_v19 }
  0x2f   :  { %4336 = vmatpush3.bf16.msra.mxu1 %v4333_v19 }
  0x30   :  { %4076 = vmatprep.subr.mxu1 %v4603_v47 }
  0xb5   :  { %v68_v4 = vpop.xlane.xlu0 %67 }
  0xb6   :  { %v73_v5 = vmul.f32 0.03125, %v68_v4  ;;  %v842_v4 = vlaneseq }
  0xb8   :  { %v75_v6 = vsub.f32 %v4683_v0, %v73_v5  ;;  %v57_v5 = vld [vmem:[%s5293_s1] sm:$0x1] }
  0xb9   :  { %v71_v7 = vpop.xlane.xlu0 %70  ;;  %vm59_vm7 = vcmp.eq.f32.partialorder %v57_v5, 0.0 }
  0xba   :  { %v74_v8 = vmul.f32 0.03125, %v71_v7  ;;  %v77_v9 = vmul.f32 %v75_v6, %v75_v6  ;;  %v91_v37 = vmul.f32 %v3843_v36, %v75_v6  ;;  %v843_v6 = vshrl.u32 %v842_v4, 7 }
  0xbc   :  { %v76_v10 = vsub.f32 %v4685_v1, %v74_v8  ;;  %v79_v11 = vsel %vm65_vm0, %v77_v9, 0.0  ;;  %v844_v7 = vsub.s32 0, %v843_v6  ;;  %v61_v8 = vsel %vm59_vm7, -1e+09, %v4603_v47  ;;  %v58_v9 = vld [vmem:[%s5293_s1 + $0x1] sm:$0x1] }
  0xbd   :  { %80 = vadd.xlane.f32.xlu1 %v79_v11  ;;  %vm60_vm8 = vcmp.eq.f32.partialorder %v58_v9, 0.0  ;;  %s4609_s1 = smov 64  }
  0xbe   :  { %v78_v12 = vmul.f32 %v76_v10, %v76_v10  ;;  %v92_v41 = vmul.f32 %v3843_v36, %v76_v10  ;;  %v4814_v10 = vrot.slane %v61_v8, %v844_v7  ;;  %v62_v15 = vsel %vm60_vm8, -1e+09, %v4603_v47 }
  0xbf   :  { %v4819_v17 = vrot.slane %v62_v15, %v844_v7 }
  0xc0   :  { %v82_v13 = vsel %vm65_vm0, %v78_v12, 0.0 }
  0xc1   :  { %83 = vadd.xlane.f32.xlu1 %v82_v13 }
 0x14a   :  { %v81_v20 = vpop.xlane.xlu1 %80 }
 0x14b   :  { %v85_v21 = vmul.f32 0.032258064, %v81_v20 }
 0x14d   :  { %4423 = vrsqrt.f32 %v85_v21  ;;  %vm95_vm1 = vcmp.eq.f32.partialorder %v85_v21, inf  ;;  %v98_v26 = vand.u32 2147483648, %v85_v21  ;;  %vm97_vm2 = vcmp.eq.f32.partialorder %v85_v21, 0.0 }
 0x14e   :  { %v84_v22 = vpop.xlane.xlu1 %83 }
 0x14f   :  { %v86_v23 = vmul.f32 0.032258064, %v84_v22 }
 0x151   :  { %4425 = vrsqrt.f32 %v86_v23  ;;  %vm102_vm3 = vcmp.eq.f32.partialorder %v86_v23, inf  ;;  %v105_v32 = vand.u32 2147483648, %v86_v23  ;;  %vm104_vm4 = vcmp.eq.f32.partialorder %v86_v23, 0.0 }
 0x157   :  { %v4424_v24 = vpop.eup %4423 }
 0x158   :  { %v94_v25 = vmul.f32 %v4424_v24, %v85_v21 }
 0x15a   :  { %v96_v27 = vsel %vm95_vm1, %v85_v21, %v94_v25 }
 0x15b   :  { %v4426_v28 = vpop.eup %4425  ;;  %v99_v29 = vsel %vm97_vm2, %v98_v26, %v96_v27 }
 0x15c   :  { %v101_v30 = vmul.f32 %v4426_v28, %v86_v23  ;;  %v107_v31 = vadd.f32 1e-06, %v99_v29 }
 0x15e   :  { %v103_v33 = vsel %vm102_vm3, %v86_v23, %v101_v30  ;;  %4427 = vrcp.f32 %v107_v31 }
 0x15f   :  { %v106_v34 = vsel %vm104_vm4, %v105_v32, %v103_v33 }
 0x160   :  { %v108_v35 = vadd.f32 1e-06, %v106_v34 }
 0x162   :  { %4429 = vrcp.f32 %v108_v35 }
 0x168   :  { %v4428_v38 = vpop.eup %4427 }
 0x169   :  { %v110_v40 = vmul.f32 %v4428_v38, %v91_v37 }
 0x16b   :  { %v117_v42 = vadd.f32 %v3844_v39, %v110_v40 }
 0x16c   :  { %v4430_v43 = vpop.eup %4429 }
 0x16d   :  { %v112_v44 = vmul.f32 %v4430_v43, %v92_v41  ;;  %4073 = vmatprep.mubr.msk.f32.mxu1 %vm65_vm0, %v117_v42 }
 0x16f   :  { %v118_v45 = vadd.f32 %v3844_v39, %v112_v44 }
 0x171   :  { %4074 = vmatmul.mubr.msk.f32.vlgmr.msra.gmra.mrb[0].mxu1 %vm65_vm0, %v118_v45 }
 0x172   :  { %4078 = vmatprep.mubr.msk.f32.mxu1 %vm4604_vm5, %v4603_v47 }
 0x244   :  { %v4075_v48 = vpop.f32.mrb[0].mxu1 }
 0x245   :  { %v4715_v49 = vadd.f32 %v4075_v48, %v3845_v46  ;;  %v200_v50 = vpop.f32.mrb[1].mxu1 }
 0x246   :  { %v4717_v51 = vadd.f32 %v3845_v46, %v200_v50 }
 0x247   :  { %213 = vrot.lane.b32.xlu1 %v4715_v49, %s4605_s10 }
 0x248   :  { %211 = vrot.lane.b32.xlu0 %v4717_v51, %s4605_s10 }
 0x24b   :  { %215 = vrot.lane.b32.xlu1 %v4717_v51, %s4606_s13 }
 0x24c   :  { %219 = vrot.lane.b32.xlu0 %v4717_v51, %s4607_s14 }
 0x24f   :  { %217 = vrot.lane.b32.xlu1 %v4715_v49, %s4606_s13 }
 0x250   :  { %223 = vrot.lane.b32.xlu0 %v4717_v51, %s4608_s15 }
 0x253   :  { %221 = vrot.lane.b32.xlu1 %v4715_v49, %s4607_s14 }
 0x257   :  { %300 = vrot.lane.b32.xlu1 %v4715_v49, %s4608_s15 }
 0x2b9   :  { %v4735_v52 = vpop.permute.xlu1 %213 }
 0x2ba   :  { %452 = vrot.lane.b32.xlu1 %v4735_v52, %s4608_s15  ;;  %v4739_v53 = vpop.permute.xlu0 %211 }
 0x2bb   :  { %376 = vrot.lane.b32.xlu0 %v4739_v53, %s4608_s15 }
 0x2bd   :  { %v4743_v54 = vpop.permute.xlu1 %215 }
 0x2be   :  { %v4745_v55 = vpop.permute.xlu0 %219 }
 0x2bf   :  { %528 = vrot.lane.b32.xlu0 %v4743_v54, %s4608_s15 }
 0x2c1   :  { %v4749_v56 = vpop.permute.xlu1 %217 }
 0x2c2   :  { %604 = vrot.lane.b32.xlu1 %v4749_v56, %s4608_s15  ;;  %v224_v57 = vpop.permute.xlu0 %223 }
 0x2c3   :  { %680 = vrot.lane.b32.xlu0 %v4745_v55, %s4608_s15  ;;  %4077 = vmatpush3.xpose.msk.msra.mxu1 %vm225_vm6, %v224_v57 }
 0x2c4   :  { %4081 = vmatprep.subr.mxu1 %v4603_v47 }
 0x2c5   :  { %v4757_v58 = vpop.permute.xlu1 %221 }
 0x2c6   :  { %756 = vrot.lane.b32.xlu1 %v4757_v58, %s4608_s15  ;;  %4079 = vmatmul.mubr.msk.f32.vlgmr.msra.gmra.mrb[2].mxu1 %vm225_vm6, %v4717_v51 }
 0x2c7   :  { %4083 = vmatprep.mubr.msk.f32.mxu1 %vm4604_vm5, %v4603_v47 }
 0x2c9   :  { %v301_v59 = vpop.permute.xlu1 %300 }
 0x2ca   :  { %4082 = vmatpush3.xpose.msk.msra.mxu1 %vm225_vm6, %v301_v59 }
 0x2cb   :  { %4091 = vmatprep.subr.mxu1 %v4603_v47 }
 0x2cd   :  { %4084 = vmatmul.mubr.msk.f32.vlgmr.msra.gmra.mrb[4].mxu1 %vm225_vm6, %v4715_v49 }
 0x2ce   :  { %4093 = vmatprep.mubr.msk.f32.mxu1 %vm4604_vm5, %v4603_v47 }
 0x32c   :  { %v453_v60 = vpop.permute.xlu1 %452 }
 0x32d   :  { %4092 = vmatpush3.xpose.msk.msra.mxu1 %vm225_vm6, %v453_v60  ;;  %v377_v61 = vpop.permute.xlu0 %376 }
 0x32e   :  { %4087 = vmatpush3.xpose.msk.msra.mxu0 %vm225_vm6, %v377_v61  ;;  %4101 = vmatprep.subr.mxu1 %v4603_v47 }
 0x32f   :  { %4096 = vmatprep.subr.mxu0 %v4603_v47 }
 0x330   :  { %4094 = vmatmul.mubr.msk.f32.vlgmr.msra.gmra.mrb[6].mxu1 %vm225_vm6, %v4735_v52 }
 0x331   :  { %4089 = vmatmul.mubr.msk.f32.vlgmr.msra.gmra.mrb[0].mxu0 %vm225_vm6, %v4739_v53  ;;  %v529_v62 = vpop.permute.xlu0 %528  ;;  %4103 = vmatprep.mubr.msk.f32.mxu1 %vm4604_vm5, %v4603_v47 }
 0x332   :  { %4097 = vmatpush3.xpose.msk.msra.mxu0 %vm225_vm6, %v529_v62  ;;  %4098 = vmatprep.mubr.msk.f32.mxu0 %vm4604_vm5, %v4603_v47 }
 0x333   :  { %4106 = vmatprep.subr.mxu0 %v4603_v47 }
 0x334   :  { %v605_v63 = vpop.permute.xlu1 %604 }
 0x335   :  { %4099 = vmatmul.mubr.msk.f32.vlgmr.msra.gmra.mrb[2].mxu0 %vm225_vm6, %v4743_v54  ;;  %4102 = vmatpush3.xpose.msk.msra.mxu1 %vm225_vm6, %v605_v63  ;;  %v681_v2 = vpop.permute.xlu0 %680 }
 0x336   :  { %4107 = vmatpush3.xpose.msk.msra.mxu0 %vm225_vm6, %v681_v2  ;;  %4108 = vmatprep.mubr.msk.f32.mxu0 %vm4604_vm5, %v4603_v47 }
 0x337   :  { %4111 = vmatprep.subr.mxu1 %v4603_v47  ;;  %4116 = vmatprep.subr.mxu0 %v4603_v47 }
 0x338   :  { %v757_v3 = vpop.permute.xlu1 %756  ;;  %4104 = vmatmul.mubr.msk.f32.vlgmr.msra.gmra.mrb[8].mxu1 %vm225_vm6, %v4749_v56 }
 0x339   :  { %4109 = vmatmul.mubr.msk.f32.vlgmr.msra.gmra.mrb[4].mxu0 %vm225_vm6, %v4745_v55  ;;  %4112 = vmatpush3.xpose.msk.msra.mxu1 %vm225_vm6, %v757_v3 }
 0x33a   :  { %4113 = vmatprep.mubr.msk.f32.mxu1 %vm4604_vm5, %v4603_v47  ;;  %4121 = vmatprep.subr.mxu1 %v4603_v47 }
 0x33b   :  { %4118 = vmatprep.mubr.msk.f32.mxu0 %vm4604_vm5, %v4603_v47 }
 0x33c   :  { %4114 = vmatmul.mubr.msk.f32.vlgmr.msra.gmra.mrb[10].mxu1 %vm225_vm6, %v4757_v58 }
 0x33d   :  { %4123 = vmatprep.mubr.msk.f32.mxu1 %vm4604_vm5, %v4603_v47 }
 0x399   :  { %v296_v11 = vpop.f32.mrb[2].mxu1 }
 0x39a   :  { %v832_v12 = vmul.f32 0.35355338, %v296_v11  ;;  %v4080_v13 = vpop.f32.mrb[3].mxu1 }
 0x39c   :  { %v852_v14 = vadd.f32 %v4814_v10, %v832_v12 }
 0x39e   :  { %v860_v16 = vsel %vm225_vm6, %v852_v14, -inf }
 0x39f   :  { %861 = vmax.xlane.f32.xlu0 %v860_v16 }
 0x3a0   :  { %v372_v18 = vpop.f32.mrb[4].mxu1 }
 0x3a1   :  { %v833_v19 = vmul.f32 0.35355338, %v372_v18  ;;  %v4085_v20 = vpop.f32.mrb[5].mxu1 }
 0x3a3   :  { %v853_v21 = vadd.f32 %v4819_v17, %v833_v19 }
 0x3a5   :  { %v863_v22 = vsel %vm225_vm6, %v853_v21, -inf }
 0x3a6   :  { %864 = vmax.xlane.f32.xlu1 %v863_v22 }
 0x403   :  { %v524_v23 = vpop.f32.mrb[6].mxu1 }
 0x404   :  { %v835_v24 = vmul.f32 0.35355338, %v524_v23  ;;  %v448_v25 = vpop.f32.mrb[0].mxu0  ;;  %v4095_v26 = vpop.f32.mrb[7].mxu1 }
 0x405   :  { %v834_v27 = vmul.f32 0.35355338, %v448_v25  ;;  %v4090_v28 = vpop.f32.mrb[1].mxu0 }
 0x406   :  { %v855_v29 = vadd.f32 %v4819_v17, %v835_v24 }
 0x407   :  { %v854_v32 = vadd.f32 %v4814_v10, %v834_v27 }
 0x408   :  { %v600_v30 = vpop.f32.mrb[2].mxu0  ;;  %v869_v31 = vsel %vm225_vm6, %v855_v29, -inf }
 0x409   :  { %v836_v33 = vmul.f32 0.35355338, %v600_v30  ;;  %870 = vmax.xlane.f32.xlu0 %v869_v31  ;;  %v4100_v34 = vpop.f32.mrb[3].mxu0  ;;  %v866_v39 = vsel %vm225_vm6, %v854_v32, -inf }
 0x40b   :  { %v676_v35 = vpop.f32.mrb[8].mxu1  ;;  %v856_v40 = vadd.f32 %v4814_v10, %v836_v33 }
 0x40c   :  { %v837_v36 = vmul.f32 0.35355338, %v676_v35  ;;  %v4105_v37 = vpop.f32.mrb[9].mxu1  ;;  %v752_v38 = vpop.f32.mrb[4].mxu0 }
 0x40d   :  { %v838_v41 = vmul.f32 0.35355338, %v752_v38  ;;  %867 = vmax.xlane.f32.xlu0 %v866_v39  ;;  %v4110_v42 = vpop.f32.mrb[5].mxu0  ;;  %v872_v50 = vsel %vm225_vm6, %v856_v40, -inf }
 0x40e   :  { %v857_v43 = vadd.f32 %v4819_v17, %v837_v36 }
 0x40f   :  { %v828_v44 = vpop.f32.mrb[10].mxu1  ;;  %v858_v57 = vadd.f32 %v4814_v10, %v838_v41 }
 0x410   :  { %v839_v45 = vmul.f32 0.35355338, %v828_v44  ;;  %v4115_v46 = vpop.f32.mrb[11].mxu1  ;;  %v875_v48 = vsel %vm225_vm6, %v857_v43, -inf }
 0x411   :  { %876 = vmax.xlane.f32.xlu1 %v875_v48  ;;  %873 = vmax.xlane.f32.xlu0 %v872_v50  ;;  %v878_v61 = vsel %vm225_vm6, %v858_v57, -inf }
 0x412   :  { %v859_v59 = vadd.f32 %v4819_v17, %v839_v45 }
 0x414   :  { %v881_v60 = vsel %vm225_vm6, %v859_v59, -inf }
 0x415   :  { %882 = vmax.xlane.f32.xlu1 %v881_v60  ;;  %879 = vmax.xlane.f32.xlu0 %v878_v61 }
 0x426   :  { %1024 = vrot.lane.b32.xlu1 %v4715_v49, %s4609_s1 }
 0x42a   :  { %1100 = vrot.lane.b32.xlu1 %v4739_v53, %s4609_s1 }
 0x42b   :  { %948 = vrot.lane.b32.xlu0 %v4717_v51, %s4609_s1 }
 0x42c   :  { %v862_v62 = vpop.xlane.xlu0 %861 }
 0x42d   :  { %v884_v63 = vsub.f32 %v852_v14, %v862_v62 }
 0x42e   :  { %1176 = vrot.lane.b32.xlu1 %v4735_v52, %s4609_s1 }
 0x42f   :  { %1252 = vrot.lane.b32.xlu0 %v4743_v54, %s4609_s1  ;;  %v892_v2 = vmul.f32 1.442695, %v884_v63 }
 0x431   :  { %4431 = vpow2.f32 %v892_v2 }
 0x432   :  { %1328 = vrot.lane.b32.xlu1 %v4749_v56, %s4609_s1 }
 0x433   :  { %v865_v3 = vpop.xlane.xlu1 %864 }
 0x434   :  { %v885_v49 = vsub.f32 %v853_v21, %v865_v3 }
 0x436   :  { %v894_v4 = vmul.f32 1.442695, %v885_v49 }
 0x438   :  { %4433 = vpow2.f32 %v894_v4 }
 0x43b   :  { %v4847_v53 = vpop.eup %4431 }
 0x43c   :  { %v908_v51 = vsel %vm225_vm6, %v4847_v53, 0.0 }
 0x442   :  { %v4851_v52 = vpop.eup %4433 }
 0x443   :  { %v911_v54 = vsel %vm225_vm6, %v4851_v52, 0.0 }
 0x44e   :  { %909 = vadd.xlane.f32.xlu0 %v908_v51 }
 0x456   :  { %912 = vadd.xlane.f32.xlu1 %v911_v54 }
 0x496   :  { %v871_v56 = vpop.xlane.xlu0 %870 }
 0x497   :  { %v887_v5 = vsub.f32 %v855_v29, %v871_v56 }
 0x499   :  { %v898_v6 = vmul.f32 1.442695, %v887_v5 }
 0x49a   :  { %v868_v7 = vpop.xlane.xlu0 %867 }
 0x49b   :  { %4435 = vpow2.f32 %v898_v6  ;;  %v886_v8 = vsub.f32 %v854_v32, %v868_v7 }
 0x49d   :  { %v896_v9 = vmul.f32 1.442695, %v886_v8 }
 0x49e   :  { %v877_v11 = vpop.xlane.xlu1 %876  ;;  %v874_v12 = vpop.xlane.xlu0 %873 }
 0x49f   :  { %4437 = vpow2.f32 %v896_v9  ;;  %v889_v13 = vsub.f32 %v857_v43, %v877_v11  ;;  %v888_v14 = vsub.f32 %v856_v40, %v874_v12  ;;  %v1588_v12 = vld [vmem:[%s5295_s3] sm:$0xff] }
 0x4a1   :  { %v902_v15 = vmul.f32 1.442695, %v889_v13  ;;  %v900_v16 = vmul.f32 1.442695, %v888_v14  ;;  %v1589_v13 = vld [vmem:[%s5295_s3 + $0x8] sm:$0xff] }
 0x4a2   :  { %v883_v18 = vpop.xlane.xlu1 %882  ;;  %v880_v19 = vpop.xlane.xlu0 %879  ;;  %v4337_v14 = vpack.c.bf16 %v1589_v13, %v1588_v12  ;;  %v1830_v12 = vld [vmem:[%s5297_s5 + $0x20] sm:$0xff]  ;;  %v1831_v13 = vld [vmem:[%s5297_s5 + $0x28] sm:$0xff] }
 0x4a3   :  { %4439 = vpow2.f32 %v902_v15  ;;  %v891_v20 = vsub.f32 %v859_v59, %v883_v18  ;;  %v890_v21 = vsub.f32 %v858_v57, %v880_v19  ;;  %v1590_v15 = vld [vmem:[%s5295_s3 + $0x10] sm:$0xff] }
 0x4a4   :  { %4441 = vpow2.f32 %v900_v16  ;;  %v1591_v16 = vld [vmem:[%s5295_s3 + $0x18] sm:$0xff] }
 0x4a5   :  { %v4436_v22 = vpop.eup %4435  ;;  %v906_v23 = vmul.f32 1.442695, %v891_v20  ;;  %v904_v24 = vmul.f32 1.442695, %v890_v21  ;;  %v4341_v18 = vpack.c.bf16 %v1591_v16, %v1590_v15 }
 0x4a6   :  { %v1025_v25 = vpop.permute.xlu1 %1024  ;;  %v949_v26 = vpop.permute.xlu0 %948  ;;  %v917_v27 = vsel %vm225_vm6, %v4436_v22, 0.0 }
 0x4a7   :  { %4443 = vpow2.f32 %v906_v23  ;;  %4122 = vmatpush3.msra.mxu1 %v1025_v25  ;;  %918 = vadd.xlane.f32.xlu1 %v917_v27 }
 0x4a8   :  { %4445 = vpow2.f32 %v904_v24  ;;  %4117 = vmatpush3.msra.mxu0 %v949_v26  ;;  %4131 = vmatprep.subr.mxu1 %v4603_v47 }
 0x4a9   :  { %v4438_v28 = vpop.eup %4437  ;;  %4126 = vmatprep.subr.mxu0 %v4603_v47 }
 0x4aa   :  { %v914_v29 = vsel %vm225_vm6, %v4438_v28, 0.0  ;;  %v1101_v38 = vpop.permute.xlu1 %1100  ;;  %v1253_v39 = vpop.permute.xlu0 %1252 }
 0x4ab   :  { %915 = vadd.xlane.f32.xlu0 %v914_v29 }
 0x4ad   :  { %v4440_v30 = vpop.eup %4439 }
 0x4ae   :  { %v4442_v31 = vpop.eup %4441  ;;  %v923_v32 = vsel %vm225_vm6, %v4440_v30, 0.0  ;;  %v1177_v40 = vpop.permute.xlu1 %1176 }
 0x4af   :  { %924 = vadd.xlane.f32.xlu1 %v923_v32  ;;  %v920_v33 = vsel %vm225_vm6, %v4442_v31, 0.0 }
 0x4b0   :  { %921 = vadd.xlane.f32.xlu0 %v920_v33 }
 0x4b1   :  { %v4861_v34 = vpop.eup %4443 }
 0x4b2   :  { %v4863_v35 = vpop.eup %4445  ;;  %v929_v36 = vsel %vm225_vm6, %v4861_v34, 0.0  ;;  %v1329_v42 = vpop.permute.xlu1 %1328 }
 0x4b3   :  { %930 = vadd.xlane.f32.xlu1 %v929_v36  ;;  %v926_v37 = vsel %vm225_vm6, %v4863_v35, 0.0 }
 0x4b4   :  { %927 = vadd.xlane.f32.xlu0 %v926_v37 }
 0x4c4   :  { %1480 = vrot.lane.b32.xlu1 %v4757_v58, %s4609_s1 }
 0x4ca   :  { %1404 = vrot.lane.b32.xlu0 %v4745_v55, %s4609_s1 }
 0x4db   :  { %v910_v41 = vpop.xlane.xlu0 %909 }
 0x4dc   :  { %4447 = vrcp.f32 %v910_v41 }
 0x4e3   :  { %v913_v43 = vpop.xlane.xlu1 %912 }
 0x4e4   :  { %4449 = vrcp.f32 %v913_v43  ;;  %v3872_v43 = vld [vmem:[#allocation5 + $0x3] ss:$0 sm:$0xff] }
 0x4e6   :  { %v4448_v44 = vpop.eup %4447 }
 0x4e7   :  { %v940_v45 = vmul.f32 %v4448_v44, %v4847_v53 }
 0x4e9   :  { %4119 = vmatmul.mubr.msk.f32.vlgmr.msra.gmra.mrb[6].mxu0 %vm225_vm6, %v940_v45 }
 0x4ea   :  { %4127 = vmatpush3.msra.mxu0 %v1101_v38  ;;  %4128 = vmatprep.mubr.msk.f32.mxu0 %vm4604_vm5, %v4603_v47 }
 0x4eb   :  { %4136 = vmatprep.subr.mxu0 %v4603_v47 }
 0x4ee   :  { %v4450_v55 = vpop.eup %4449 }
 0x4ef   :  { %v941_v58 = vmul.f32 %v4450_v55, %v4851_v52 }
 0x4f1   :  { %4124 = vmatmul.mubr.msk.f32.vlgmr.msra.gmra.mrb[12].mxu1 %vm225_vm6, %v941_v58 }
 0x4f2   :  { %4132 = vmatpush3.msra.mxu1 %v1177_v40  ;;  %4133 = vmatprep.mubr.msk.f32.mxu1 %vm4604_vm5, %v4603_v47 }
 0x4f3   :  { %4141 = vmatprep.subr.mxu1 %v4603_v47 }
 0x534   :  { %v919_v46 = vpop.xlane.xlu1 %918 }
 0x535   :  { %4451 = vrcp.f32 %v919_v46 }
 0x538   :  { %v916_v48 = vpop.xlane.xlu0 %915 }
 0x539   :  { %4453 = vrcp.f32 %v916_v48 }
 0x53c   :  { %v925_v50 = vpop.xlane.xlu1 %924 }
 0x53d   :  { %4455 = vrcp.f32 %v925_v50  ;;  %v922_v57 = vpop.xlane.xlu0 %921 }
 0x53e   :  { %4457 = vrcp.f32 %v922_v57 }
 0x53f   :  { %v4452_v59 = vpop.eup %4451 }
 0x540   :  { %v943_v60 = vmul.f32 %v4452_v59, %v4436_v22  ;;  %v931_v61 = vpop.xlane.xlu1 %930 }
 0x541   :  { %4459 = vrcp.f32 %v931_v61  ;;  %v928_v62 = vpop.xlane.xlu0 %927 }
 0x542   :  { %4461 = vrcp.f32 %v928_v62  ;;  %4134 = vmatmul.mubr.msk.f32.vlgmr.msra.gmra.mrb[14].mxu1 %vm225_vm6, %v943_v60 }
 0x543   :  { %v4454_v63 = vpop.eup %4453  ;;  %4142 = vmatpush3.msra.mxu1 %v1329_v42  ;;  %4143 = vmatprep.mubr.msk.f32.mxu1 %vm4604_vm5, %v4603_v47 }
 0x544   :  { %v942_v2 = vmul.f32 %v4454_v63, %v4438_v28  ;;  %4151 = vmatprep.subr.mxu1 %v4603_v47  ;;  %v1481_v51 = vpop.permute.xlu1 %1480 }
 0x545   :  { %v1405_v54 = vpop.permute.xlu0 %1404 }
 0x546   :  { %4129 = vmatmul.mubr.msk.f32.vlgmr.msra.gmra.mrb[8].mxu0 %vm225_vm6, %v942_v2 }
 0x547   :  { %v4456_v3 = vpop.eup %4455  ;;  %4137 = vmatpush3.msra.mxu0 %v1253_v39  ;;  %4138 = vmatprep.mubr.msk.f32.mxu0 %vm4604_vm5, %v4603_v47 }
 0x548   :  { %v4458_v49 = vpop.eup %4457  ;;  %v945_v4 = vmul.f32 %v4456_v3, %v4440_v30  ;;  %4146 = vmatprep.subr.mxu0 %v4603_v47 }
 0x549   :  { %v944_v53 = vmul.f32 %v4458_v49, %v4442_v31 }
 0x54a   :  { %4144 = vmatmul.mubr.msk.f32.vlgmr.msra.gmra.mrb[16].mxu1 %vm225_vm6, %v945_v4  ;;  %v1734_v4 = vld [vmem:[%s5296_s4] sm:$0xff] }
 0x54b   :  { %v4460_v52 = vpop.eup %4459  ;;  %4139 = vmatmul.mubr.msk.f32.vlgmr.msra.gmra.mrb[10].mxu0 %vm225_vm6, %v944_v53  ;;  %4152 = vmatpush3.msra.mxu1 %v1481_v51  ;;  %v1735_v53 = vld [vmem:[%s5296_s4 + $0x8] sm:$0xff]  ;;  %v1736_v51 = vld [vmem:[%s5296_s4 + $0x10] sm:$0xff] }
 0x54c   :  { %v4462_v56 = vpop.eup %4461  ;;  %v947_v5 = vmul.f32 %v4460_v52, %v4861_v34  ;;  %4147 = vmatpush3.msra.mxu0 %v1405_v54  ;;  %4148 = vmatprep.mubr.msk.f32.mxu0 %vm4604_vm5, %v4603_v47  ;;  %v4345_v52 = vpack.c.bf16 %v1735_v53, %v1734_v4  ;;  %v1737_v54 = vld [vmem:[%s5296_s4 + $0x18] sm:$0xff] }
 0x54d   :  { %v946_v6 = vmul.f32 %v4462_v56, %v4863_v35  ;;  %4153 = vmatprep.mubr.msk.f32.mxu1 %vm4604_vm5, %v4603_v47  ;;  %4338 = vmatprep.subr.bf16.mxu0 %v4337_v14  ;;  %v4349_v56 = vpack.c.bf16 %v1737_v54, %v1736_v51 }
 0x54e   :  { %4154 = vmatmul.mubr.msk.f32.vlgmr.msra.gmra.mrb[18].mxu1 %vm225_vm6, %v947_v5  ;;  %4346 = vmatprep.subr.bf16.mxu1 %v4345_v52  ;;  %v1826_v5 = vld [vmem:[%s5297_s5] sm:$0xff] }
 0x54f   :  { %4149 = vmatmul.mubr.msk.f32.vlgmr.msra.gmra.mrb[12].mxu0 %vm225_vm6, %v946_v6  ;;  %4348 = vmatpush3.bf16.msra.mxu1 %v4345_v52  ;;  %v1827_v6 = vld [vmem:[%s5297_s5 + $0x8] sm:$0xff] }
 0x550   :  { %4340 = vmatpush3.bf16.msra.mxu0 %v4337_v14  ;;  %4350 = vmatprep.subr.bf16.mxu1 %v4349_v56  ;;  %v4361_v14 = vpack.c.bf16 %v1831_v13, %v1830_v12  ;;  %v3888_v13 = vld [vmem:[%s5294_s2 + $0x38] sm:$0xff] }
 0x551   :  { %4342 = vmatprep.subr.bf16.mxu0 %v4341_v18 }
 0x553   :  { %4352 = vmatpush3.bf16.msra.mxu1 %v4349_v56 }
 0x554   :  { %4344 = vmatpush3.bf16.msra.mxu0 %v4341_v18 }
 0x5bc   :  { %v1020_v7 = vpop.f32.mrb[6].mxu0 }
 0x5bd   :  { %v4120_v8 = vpop.f32.mrb[7].mxu0 }
 0x5be   :  { %v4353_v8 = vpack.c.bf16 %v1827_v6, %v1826_v5 }
 0x5c0   :  { %4354 = vmatprep.subr.bf16.mxu0 %v4353_v8 }
 0x5c4   :  { %v1096_v9 = vpop.f32.mrb[12].mxu1 }
 0x5c5   :  { %v4125_v11 = vpop.f32.mrb[13].mxu1 }
 0x615   :  { %v1248_v19 = vpop.f32.mrb[14].mxu1 }
 0x616   :  { %1560 = vrot.lane.b32.xlu1 %v1248_v19, %s4601_s12  ;;  %v4135_v20 = vpop.f32.mrb[15].mxu1 }
 0x619   :  { %v1172_v21 = vpop.f32.mrb[8].mxu0 }
 0x61a   :  { %1558 = vrot.lane.b32.xlu0 %v1172_v21, %s4601_s12  ;;  %v4130_v22 = vpop.f32.mrb[9].mxu0 }
 0x61d   :  { %v1400_v23 = vpop.f32.mrb[16].mxu1 }
 0x61e   :  { %v1324_v24 = vpop.f32.mrb[10].mxu0  ;;  %1568 = vrot.lane.b32.xlu1 %v1400_v23, %s4610_s26  ;;  %v4145_v25 = vpop.f32.mrb[17].mxu1 }
 0x61f   :  { %1566 = vrot.lane.b32.xlu0 %v1324_v24, %s4610_s26  ;;  %v4140_v26 = vpop.f32.mrb[11].mxu0 }
 0x621   :  { %v1552_v27 = vpop.f32.mrb[18].mxu1 }
 0x622   :  { %v1476_v28 = vpop.f32.mrb[12].mxu0  ;;  %1576 = vrot.lane.b32.xlu1 %v1552_v27, %s4611_s27  ;;  %v4155_v29 = vpop.f32.mrb[19].mxu1 }
 0x623   :  { %1574 = vrot.lane.b32.xlu0 %v1476_v28, %s4611_s27  ;;  %v4150_v30 = vpop.f32.mrb[13].mxu0 }
 0x688   :  { %v1561_v31 = vpop.permute.xlu1 %1560 }
 0x689   :  { %v1581_v35 = vsel %vm225_vm6, %v1096_v9, %v1561_v31  ;;  %v1829_v9 = vld [vmem:[%s5297_s5 + $0x18] sm:$0xff] }
 0x68c   :  { %v1559_v32 = vpop.permute.xlu0 %1558 }
 0x68d   :  { %v1580_v36 = vsel %vm225_vm6, %v1020_v7, %v1559_v32  ;;  %v1828_v7 = vld [vmem:[%s5297_s5 + $0x10] sm:$0xff] }
 0x68e   :  { %v4357_v11 = vpack.c.bf16 %v1829_v9, %v1828_v7  ;;  %v3875_v32 = vld [vmem:[#allocation5 + $0x4] ss:$0 sm:$0xff]  ;;  %v3886_v9 = vld [vmem:[%s5294_s2 + $0x28] sm:$0xff] }
 0x690   :  { %v1569_v33 = vpop.permute.xlu1 %1568 }
 0x691   :  { %v1567_v34 = vpop.permute.xlu0 %1566  ;;  %v1584_v37 = vsel %vm1582_vm9, %v1581_v35, %v1569_v33  ;;  %v3876_v35 = vld [vmem:[#allocation5 + $0x5] ss:$0 sm:$0xff] }
 0x692   :  { %v1583_v39 = vsel %vm1582_vm9, %v1580_v36, %v1567_v34 }
 0x694   :  { %v1577_v38 = vpop.permute.xlu1 %1576 }
 0x695   :  { %v1587_v40 = vsel %vm1585_vm10, %v1584_v37, %v1577_v38  ;;  %v1575_v41 = vpop.permute.xlu0 %1574 }
 0x696   :  { %v1586_v42 = vsel %vm1585_vm10, %v1583_v39, %v1575_v41 }
 0x697   :  { %4164 = vmatprep.mubr.msk.f32.mxu0 %vm65_vm0, %v1586_v42  ;;  %v1832_v42 = vld [vmem:[%s5297_s5 + $0x30] sm:$0xff] }
 0x698   :  { %4165 = vmatmul.mubr.msk.f32.vlgmr.msra.gmra.mrb[14].mxu0 %vm65_vm0, %v1587_v40 }
 0x699   :  { %4356 = vmatpush3.bf16.msra.mxu0 %v4353_v8  ;;  %v3885_v8 = vld [vmem:[%s5294_s2 + $0x20] sm:$0xff] }
 0x69a   :  { %4358 = vmatprep.subr.bf16.mxu0 %v4357_v11  ;;  %v4369_v12 = vpack.c.bf16 %v3886_v9, %v3885_v8 }
 0x69c   :  { %4370 = vmatprep.subr.bf16.mxu1 %v4369_v12 }
 0x69d   :  { %4360 = vmatpush3.bf16.msra.mxu0 %v4357_v11  ;;  %v3887_v11 = vld [vmem:[%s5294_s2 + $0x30] sm:$0xff] }
 0x69e   :  { %4362 = vmatprep.subr.bf16.mxu0 %v4361_v14 }
 0x6a1   :  { %4364 = vmatpush3.bf16.msra.mxu0 %v4361_v14  ;;  %v4373_v14 = vpack.c.bf16 %v3888_v13, %v3887_v11 }
 0x76b   :  { %v4166_v44 = vpop.f32.mrb[14].mxu0 }
 0x76c   :  { %v1675_v45 = vadd.f32 %v4166_v44, %v3872_v43  ;;  %v1669_v55 = vpop.f32.mrb[15].mxu0 }
 0x76d   :  { %v1670_v58 = vadd.f32 %v3872_v43, %v1669_v55  ;;  %v1833_v43 = vld [vmem:[%s5297_s5 + $0x38] sm:$0xff] }
 0x76e   :  { %v4928_v46 = vadd.f32 %v1675_v45, %v4685_v1  ;;  %v4365_v44 = vpack.c.bf16 %v1833_v43, %v1832_v42  ;;  %v3877_v45 = vld [vmem:[#allocation5 + $0x6] ss:$0 sm:$0xff]  ;;  %v3889_v42 = vld [vmem:[#allocation5 + $0xa] ss:$0 sm:$0xff] }
 0x76f   :  { %v4931_v48 = vadd.f32 %v1670_v58, %v4683_v0 }
 0x770   :  { %v1685_v50 = vsel %vm65_vm0, %v4928_v46, 0.0  ;;  %4366 = vmatprep.subr.bf16.mxu0 %v4365_v44 }
 0x771   :  { %1686 = vadd.xlane.f32.xlu1 %v1685_v50  ;;  %v1682_v57 = vsel %vm65_vm0, %v4931_v48, 0.0  ;;  %4368 = vmatpush3.bf16.msra.mxu0 %v4365_v44 }
 0x772   :  { %1683 = vadd.xlane.f32.xlu0 %v1682_v57  ;;  %4218 = vmatprep.subr.mxu0 %v4603_v47 }
 0x7fe   :  { %v1687_v59 = vpop.xlane.xlu1 %1686 }
 0x7ff   :  { %v1689_v60 = vmul.f32 0.03125, %v1687_v59  ;;  %v1684_v61 = vpop.xlane.xlu0 %1683 }
 0x800   :  { %v1688_v62 = vmul.f32 0.03125, %v1684_v61  ;;  %v3880_v61 = vld [vmem:[#allocation5 + $0x7] ss:$0 sm:$0xff] }
 0x801   :  { %v1691_v63 = vsub.f32 %v4928_v46, %v1689_v60 }
 0x802   :  { %v1690_v1 = vsub.f32 %v4931_v48, %v1688_v62 }
 0x803   :  { %v1693_v3 = vmul.f32 %v1691_v63, %v1691_v63  ;;  %v1707_v37 = vmul.f32 %v3875_v32, %v1691_v63 }
 0x804   :  { %v1692_v2 = vmul.f32 %v1690_v1, %v1690_v1  ;;  %v1706_v33 = vmul.f32 %v3875_v32, %v1690_v1  ;;  %v3883_v32 = vld [vmem:[#allocation5 + $0x8] ss:$0 sm:$0xff] }
 0x805   :  { %v1697_v49 = vsel %vm65_vm0, %v1693_v3, 0.0 }
 0x806   :  { %v1694_v0 = vsel %vm65_vm0, %v1692_v2, 0.0 }
 0x807   :  { %1695 = vadd.xlane.f32.xlu0 %v1694_v0 }
 0x80b   :  { %1698 = vadd.xlane.f32.xlu0 %v1697_v49 }
 0x894   :  { %v1696_v15 = vpop.xlane.xlu0 %1695 }
 0x895   :  { %v1700_v16 = vmul.f32 0.032258064, %v1696_v15 }
 0x897   :  { %4463 = vrsqrt.f32 %v1700_v16  ;;  %vm1710_vm11 = vcmp.eq.f32.partialorder %v1700_v16, inf  ;;  %v1713_v22 = vand.u32 2147483648, %v1700_v16  ;;  %vm1712_vm12 = vcmp.eq.f32.partialorder %v1700_v16, 0.0 }
 0x898   :  { %v1699_v18 = vpop.xlane.xlu0 %1698 }
 0x899   :  { %v1701_v19 = vmul.f32 0.032258064, %v1699_v18 }
 0x89b   :  { %4465 = vrsqrt.f32 %v1701_v19  ;;  %vm1717_vm13 = vcmp.eq.f32.partialorder %v1701_v19, inf  ;;  %v1720_v28 = vand.u32 2147483648, %v1701_v19  ;;  %vm1719_vm14 = vcmp.eq.f32.partialorder %v1701_v19, 0.0 }
 0x8a1   :  { %v4464_v20 = vpop.eup %4463 }
 0x8a2   :  { %v1709_v21 = vmul.f32 %v4464_v20, %v1700_v16 }
 0x8a4   :  { %v1711_v23 = vsel %vm1710_vm11, %v1700_v16, %v1709_v21 }
 0x8a5   :  { %v4466_v24 = vpop.eup %4465  ;;  %v1714_v25 = vsel %vm1712_vm12, %v1713_v22, %v1711_v23 }
 0x8a6   :  { %v1716_v26 = vmul.f32 %v4466_v24, %v1701_v19  ;;  %v1722_v27 = vadd.f32 1e-06, %v1714_v25 }
 0x8a8   :  { %v1718_v29 = vsel %vm1717_vm13, %v1701_v19, %v1716_v26  ;;  %4467 = vrcp.f32 %v1722_v27 }
 0x8a9   :  { %v1721_v30 = vsel %vm1719_vm14, %v1720_v28, %v1718_v29 }
 0x8aa   :  { %v1723_v31 = vadd.f32 1e-06, %v1721_v30 }
 0x8ac   :  { %4469 = vrcp.f32 %v1723_v31 }
 0x8b2   :  { %v4468_v34 = vpop.eup %4467 }
 0x8b3   :  { %v1725_v36 = vmul.f32 %v4468_v34, %v1706_v33 }
 0x8b5   :  { %v1732_v38 = vadd.f32 %v3876_v35, %v1725_v36 }
 0x8b6   :  { %v4470_v39 = vpop.eup %4469 }
 0x8b7   :  { %v1727_v40 = vmul.f32 %v4470_v39, %v1707_v37  ;;  %4175 = vmatprep.mubr.msk.f32.mxu1 %vm65_vm0, %v1732_v38  ;;  %v3884_v37 = vld [vmem:[#allocation5 + $0x9] ss:$0 sm:$0xff] }
 0x8b9   :  { %v1733_v41 = vadd.f32 %v3876_v35, %v1727_v40 }
 0x8bb   :  { %4176 = vmatmul.mubr.msk.f32.vlgmr.msra.gmra.mrb[20].mxu1 %vm65_vm0, %v1733_v41 }
 0x8bc   :  { %4372 = vmatpush3.bf16.msra.mxu1 %v4369_v12 }
 0x8bd   :  { %4374 = vmatprep.subr.bf16.mxu1 %v4373_v14 }
 0x8c0   :  { %4376 = vmatpush3.bf16.msra.mxu1 %v4373_v14 }
 0x8c1   :  { %4208 = vmatprep.subr.mxu1 %v4603_v47 }
 0x98e   :  { %v4177_v55 = vpop.f32.mrb[20].mxu1 }
 0x98f   :  { %v1821_v58 = vadd.f32 %v4177_v55, %v3877_v45  ;;  %v1815_v50 = vpop.f32.mrb[21].mxu1 }
 0x990   :  { %v1816_v57 = vadd.f32 %v3877_v45, %v1815_v50 }
 0x991   :  { %v1825_v60 = vmax.f32 %v1821_v58, 0.0 }
 0x992   :  { %v1824_v59 = vmax.f32 %v1816_v57, 0.0 }
 0x994   :  { %4194 = vmatprep.mubr.msk.f32.mxu0 %vm1839_vm15, %v1824_v59 }
 0x995   :  { %4195 = vmatmul.mubr.msk.f32.vlgmr.msra.gmra.mrb[16].mxu0 %vm1839_vm15, %v1825_v60 }
 0x996   :  { %4220 = vmatprep.mubr.msk.f32.mxu0 %vm4604_vm5, %v4603_v47 }
 0xa68   :  { %v4196_v62 = vpop.f32.mrb[16].mxu0 }
 0xa69   :  { %v1918_v63 = vadd.f32 %v4196_v62, %v3880_v61  ;;  %v1912_v1 = vpop.f32.mrb[17].mxu0 }
 0xa6a   :  { %v1913_v2 = vadd.f32 %v3880_v61, %v1912_v1 }
 0xa6b   :  { %v4985_v0 = vadd.f32 %v1918_v63, %v4928_v46 }
 0xa6c   :  { %v4988_v3 = vadd.f32 %v1913_v2, %v4931_v48 }
 0xa6d   :  { %v1928_v49 = vsel %vm65_vm0, %v4985_v0, 0.0 }
 0xa6e   :  { %1929 = vadd.xlane.f32.xlu1 %v1928_v49  ;;  %v1925_v4 = vsel %vm65_vm0, %v4988_v3, 0.0 }
 0xa6f   :  { %1926 = vadd.xlane.f32.xlu0 %v1925_v4 }
 0xafb   :  { %v1930_v53 = vpop.xlane.xlu1 %1929 }
 0xafc   :  { %v1932_v51 = vmul.f32 0.03125, %v1930_v53  ;;  %v1927_v52 = vpop.xlane.xlu0 %1926 }
 0xafd   :  { %v1931_v54 = vmul.f32 0.03125, %v1927_v52 }
 0xafe   :  { %v1934_v56 = vsub.f32 %v4985_v0, %v1932_v51 }
 0xaff   :  { %v1933_v46 = vsub.f32 %v4988_v3, %v1931_v54 }
 0xb00   :  { %v1936_v5 = vmul.f32 %v1934_v56, %v1934_v56  ;;  %v1950_v33 = vmul.f32 %v3883_v32, %v1934_v56 }
 0xb01   :  { %v1935_v6 = vmul.f32 %v1933_v46, %v1933_v46  ;;  %v1949_v35 = vmul.f32 %v3883_v32, %v1933_v46 }
 0xb02   :  { %v1940_v48 = vsel %vm65_vm0, %v1936_v5, 0.0 }
 0xb03   :  { %1941 = vadd.xlane.f32.xlu1 %v1940_v48  ;;  %v1937_v7 = vsel %vm65_vm0, %v1935_v6, 0.0 }
 0xb04   :  { %1938 = vadd.xlane.f32.xlu0 %v1937_v7 }
 0xb90   :  { %v1942_v15 = vpop.xlane.xlu1 %1941 }
 0xb91   :  { %v1944_v16 = vmul.f32 0.032258064, %v1942_v15  ;;  %v1939_v18 = vpop.xlane.xlu0 %1938 }
 0xb92   :  { %v1943_v19 = vmul.f32 0.032258064, %v1939_v18 }
 0xb93   :  { %4471 = vrsqrt.f32 %v1944_v16  ;;  %vm1960_vm1 = vcmp.eq.f32.partialorder %v1944_v16, inf  ;;  %v1963_v23 = vand.u32 2147483648, %v1944_v16  ;;  %vm1962_vm2 = vcmp.eq.f32.partialorder %v1944_v16, 0.0 }
 0xb94   :  { %4473 = vrsqrt.f32 %v1943_v19  ;;  %vm1953_vm3 = vcmp.eq.f32.partialorder %v1943_v19, inf  ;;  %v1956_v26 = vand.u32 2147483648, %v1943_v19  ;;  %vm1955_vm4 = vcmp.eq.f32.partialorder %v1943_v19, 0.0 }
 0xb9d   :  { %v4472_v20 = vpop.eup %4471 }
 0xb9e   :  { %v4474_v21 = vpop.eup %4473  ;;  %v1959_v22 = vmul.f32 %v4472_v20, %v1944_v16 }
 0xb9f   :  { %v1952_v24 = vmul.f32 %v4474_v21, %v1943_v19 }
 0xba0   :  { %v1961_v25 = vsel %vm1960_vm1, %v1944_v16, %v1959_v22 }
 0xba1   :  { %v1964_v27 = vsel %vm1962_vm2, %v1963_v23, %v1961_v25  ;;  %v1954_v28 = vsel %vm1953_vm3, %v1943_v19, %v1952_v24 }
 0xba2   :  { %v1966_v29 = vadd.f32 1e-06, %v1964_v27  ;;  %v1957_v30 = vsel %vm1955_vm4, %v1956_v26, %v1954_v28 }
 0xba3   :  { %v1965_v31 = vadd.f32 1e-06, %v1957_v30 }
 0xba4   :  { %4475 = vrcp.f32 %v1966_v29 }
 0xba5   :  { %4477 = vrcp.f32 %v1965_v31 }
 0xbae   :  { %v4476_v34 = vpop.eup %4475 }
 0xbaf   :  { %v4478_v36 = vpop.eup %4477  ;;  %v1970_v38 = vmul.f32 %v4476_v34, %v1950_v33 }
 0xbb0   :  { %v1968_v39 = vmul.f32 %v4478_v36, %v1949_v35 }
 0xbb1   :  { %v1976_v41 = vadd.f32 %v3884_v37, %v1970_v38 }
 0xbb2   :  { %v1975_v40 = vadd.f32 %v3884_v37, %v1968_v39 }
 0xbb4   :  { %4205 = vmatprep.mubr.msk.f32.mxu1 %vm65_vm0, %v1975_v40 }
 0xbb5   :  { %4206 = vmatmul.mubr.msk.f32.vlgmr.msra.gmra.mrb[22].mxu1 %vm65_vm0, %v1976_v41 }
 0xbb6   :  { %4210 = vmatprep.mubr.msk.f32.mxu1 %vm4604_vm5, %v4603_v47 }
 0xc88   :  { %v4207_v43 = vpop.f32.mrb[22].mxu1 }
 0xc89   :  { %v5015_v44 = vadd.f32 %v4207_v43, %v3889_v42  ;;  %v2059_v45 = vpop.f32.mrb[23].mxu1 }
 0xc8a   :  { %v5017_v55 = vadd.f32 %v3889_v42, %v2059_v45 }
 0xc8b   :  { %2072 = vrot.lane.b32.xlu1 %v5015_v44, %s4605_s10 }
 0xc8c   :  { %2070 = vrot.lane.b32.xlu0 %v5017_v55, %s4605_s10 }
 0xc8f   :  { %2074 = vrot.lane.b32.xlu1 %v5017_v55, %s4606_s13 }
 0xc90   :  { %2078 = vrot.lane.b32.xlu0 %v5017_v55, %s4607_s14 }
 0xc93   :  { %2076 = vrot.lane.b32.xlu1 %v5015_v44, %s4606_s13 }
 0xc94   :  { %2082 = vrot.lane.b32.xlu0 %v5017_v55, %s4608_s15 }
 0xc97   :  { %2080 = vrot.lane.b32.xlu1 %v5015_v44, %s4607_s14 }
 0xc9b   :  { %2158 = vrot.lane.b32.xlu1 %v5015_v44, %s4608_s15 }
 0xcfd   :  { %v5035_v58 = vpop.permute.xlu1 %2072 }
 0xcfe   :  { %2310 = vrot.lane.b32.xlu1 %v5035_v58, %s4608_s15  ;;  %v5039_v50 = vpop.permute.xlu0 %2070 }
 0xcff   :  { %2234 = vrot.lane.b32.xlu0 %v5039_v50, %s4608_s15 }
 0xd01   :  { %v5043_v57 = vpop.permute.xlu1 %2074 }
 0xd02   :  { %v5045_v59 = vpop.permute.xlu0 %2078 }
 0xd03   :  { %2386 = vrot.lane.b32.xlu0 %v5043_v57, %s4608_s15 }
 0xd05   :  { %v5049_v60 = vpop.permute.xlu1 %2076 }
 0xd06   :  { %2462 = vrot.lane.b32.xlu1 %v5049_v60, %s4608_s15  ;;  %v2083_v61 = vpop.permute.xlu0 %2082 }
 0xd07   :  { %2538 = vrot.lane.b32.xlu0 %v5045_v59, %s4608_s15  ;;  %4209 = vmatpush3.xpose.msk.msra.mxu1 %vm225_vm6, %v2083_v61 }
 0xd08   :  { %4213 = vmatprep.subr.mxu1 %v4603_v47 }
 0xd09   :  { %v5057_v62 = vpop.permute.xlu1 %2080 }
 0xd0a   :  { %2614 = vrot.lane.b32.xlu1 %v5057_v62, %s4608_s15  ;;  %4211 = vmatmul.mubr.msk.f32.vlgmr.msra.gmra.mrb[24].mxu1 %vm225_vm6, %v5017_v55 }
 0xd0b   :  { %4215 = vmatprep.mubr.msk.f32.mxu1 %vm4604_vm5, %v4603_v47 }
 0xd0d   :  { %v2159_v63 = vpop.permute.xlu1 %2158 }
 0xd0e   :  { %4214 = vmatpush3.xpose.msk.msra.mxu1 %vm225_vm6, %v2159_v63 }
 0xd0f   :  { %4223 = vmatprep.subr.mxu1 %v4603_v47 }
 0xd11   :  { %4216 = vmatmul.mubr.msk.f32.vlgmr.msra.gmra.mrb[26].mxu1 %vm225_vm6, %v5015_v44 }
 0xd12   :  { %4225 = vmatprep.mubr.msk.f32.mxu1 %vm4604_vm5, %v4603_v47 }
 0xd70   :  { %v2311_v1 = vpop.permute.xlu1 %2310 }
 0xd71   :  { %4224 = vmatpush3.xpose.msk.msra.mxu1 %vm225_vm6, %v2311_v1  ;;  %v2235_v2 = vpop.permute.xlu0 %2234 }
 0xd72   :  { %4219 = vmatpush3.xpose.msk.msra.mxu0 %vm225_vm6, %v2235_v2  ;;  %4233 = vmatprep.subr.mxu1 %v4603_v47 }
 0xd73   :  { %4228 = vmatprep.subr.mxu0 %v4603_v47 }
 0xd74   :  { %4226 = vmatmul.mubr.msk.f32.vlgmr.msra.gmra.mrb[28].mxu1 %vm225_vm6, %v5035_v58 }
 0xd75   :  { %4221 = vmatmul.mubr.msk.f32.vlgmr.msra.gmra.mrb[18].mxu0 %vm225_vm6, %v5039_v50  ;;  %v2387_v49 = vpop.permute.xlu0 %2386  ;;  %4235 = vmatprep.mubr.msk.f32.mxu1 %vm4604_vm5, %v4603_v47 }
 0xd76   :  { %4229 = vmatpush3.xpose.msk.msra.mxu0 %vm225_vm6, %v2387_v49  ;;  %4230 = vmatprep.mubr.msk.f32.mxu0 %vm4604_vm5, %v4603_v47 }
 0xd77   :  { %4238 = vmatprep.subr.mxu0 %v4603_v47 }
 0xd78   :  { %v2463_v4 = vpop.permute.xlu1 %2462 }
 0xd79   :  { %4231 = vmatmul.mubr.msk.f32.vlgmr.msra.gmra.mrb[20].mxu0 %vm225_vm6, %v5043_v57  ;;  %4234 = vmatpush3.xpose.msk.msra.mxu1 %vm225_vm6, %v2463_v4  ;;  %v2539_v53 = vpop.permute.xlu0 %2538 }
 0xd7a   :  { %4239 = vmatpush3.xpose.msk.msra.mxu0 %vm225_vm6, %v2539_v53  ;;  %4240 = vmatprep.mubr.msk.f32.mxu0 %vm4604_vm5, %v4603_v47 }
 0xd7b   :  { %4243 = vmatprep.subr.mxu1 %v4603_v47  ;;  %4248 = vmatprep.subr.mxu0 %v4603_v47 }
 0xd7c   :  { %v2615_v51 = vpop.permute.xlu1 %2614  ;;  %4236 = vmatmul.mubr.msk.f32.vlgmr.msra.gmra.mrb[30].mxu1 %vm225_vm6, %v5049_v60 }
 0xd7d   :  { %4241 = vmatmul.mubr.msk.f32.vlgmr.msra.gmra.mrb[22].mxu0 %vm225_vm6, %v5045_v59  ;;  %4244 = vmatpush3.xpose.msk.msra.mxu1 %vm225_vm6, %v2615_v51 }
 0xd7e   :  { %4245 = vmatprep.mubr.msk.f32.mxu1 %vm4604_vm5, %v4603_v47  ;;  %4253 = vmatprep.subr.mxu1 %v4603_v47 }
 0xd7f   :  { %4250 = vmatprep.mubr.msk.f32.mxu0 %vm4604_vm5, %v4603_v47 }
 0xd80   :  { %4246 = vmatmul.mubr.msk.f32.vlgmr.msra.gmra.mrb[32].mxu1 %vm225_vm6, %v5057_v62 }
 0xd81   :  { %4255 = vmatprep.mubr.msk.f32.mxu1 %vm4604_vm5, %v4603_v47 }
 0xddd   :  { %v2154_v52 = vpop.f32.mrb[24].mxu1 }
 0xdde   :  { %v2690_v54 = vmul.f32 0.35355338, %v2154_v52  ;;  %v4212_v56 = vpop.f32.mrb[25].mxu1 }
 0xde0   :  { %v2698_v46 = vadd.f32 %v2690_v54, %v4814_v10 }
 0xde2   :  { %v2706_v5 = vsel %vm225_vm6, %v2698_v46, -inf }
 0xde3   :  { %2707 = vmax.xlane.f32.xlu0 %v2706_v5 }
 0xde4   :  { %v2230_v6 = vpop.f32.mrb[26].mxu1 }
 0xde5   :  { %v2691_v48 = vmul.f32 0.35355338, %v2230_v6  ;;  %v4217_v7 = vpop.f32.mrb[27].mxu1 }
 0xde7   :  { %v2699_v8 = vadd.f32 %v2691_v48, %v4819_v17 }
 0xde9   :  { %v2709_v9 = vsel %vm225_vm6, %v2699_v8, -inf }
 0xdea   :  { %2710 = vmax.xlane.f32.xlu1 %v2709_v9 }
 0xe47   :  { %v2382_v11 = vpop.f32.mrb[28].mxu1 }
 0xe48   :  { %v2693_v12 = vmul.f32 0.35355338, %v2382_v11  ;;  %v2306_v13 = vpop.f32.mrb[18].mxu0  ;;  %v4227_v14 = vpop.f32.mrb[29].mxu1 }
 0xe49   :  { %v2692_v15 = vmul.f32 0.35355338, %v2306_v13  ;;  %v4222_v16 = vpop.f32.mrb[19].mxu0 }
 0xe4a   :  { %v2701_v18 = vadd.f32 %v2693_v12, %v4819_v17 }
 0xe4b   :  { %v2700_v21 = vadd.f32 %v2692_v15, %v4814_v10 }
 0xe4c   :  { %v2458_v19 = vpop.f32.mrb[20].mxu0  ;;  %v2715_v20 = vsel %vm225_vm6, %v2701_v18, -inf }
 0xe4d   :  { %v2694_v22 = vmul.f32 0.35355338, %v2458_v19  ;;  %2716 = vmax.xlane.f32.xlu0 %v2715_v20  ;;  %v4232_v23 = vpop.f32.mrb[21].mxu0  ;;  %v2712_v28 = vsel %vm225_vm6, %v2700_v21, -inf }
 0xe4f   :  { %v2534_v24 = vpop.f32.mrb[30].mxu1  ;;  %v2702_v29 = vadd.f32 %v2694_v22, %v4814_v10 }
 0xe50   :  { %v2695_v25 = vmul.f32 0.35355338, %v2534_v24  ;;  %v4237_v26 = vpop.f32.mrb[31].mxu1  ;;  %v2610_v27 = vpop.f32.mrb[22].mxu0 }
 0xe51   :  { %v2696_v30 = vmul.f32 0.35355338, %v2610_v27  ;;  %2713 = vmax.xlane.f32.xlu0 %v2712_v28  ;;  %v4242_v31 = vpop.f32.mrb[23].mxu0  ;;  %v2718_v37 = vsel %vm225_vm6, %v2702_v29, -inf }
 0xe52   :  { %v2703_v32 = vadd.f32 %v2695_v25, %v4819_v17 }
 0xe53   :  { %v2686_v33 = vpop.f32.mrb[32].mxu1  ;;  %v2704_v38 = vadd.f32 %v2696_v30, %v4814_v10 }
 0xe54   :  { %v2697_v34 = vmul.f32 0.35355338, %v2686_v33  ;;  %v4247_v35 = vpop.f32.mrb[33].mxu1  ;;  %v2721_v36 = vsel %vm225_vm6, %v2703_v32, -inf }
 0xe55   :  { %2722 = vmax.xlane.f32.xlu1 %v2721_v36  ;;  %2719 = vmax.xlane.f32.xlu0 %v2718_v37  ;;  %v2724_v41 = vsel %vm225_vm6, %v2704_v38, -inf }
 0xe56   :  { %v2705_v39 = vadd.f32 %v2697_v34, %v4819_v17 }
 0xe58   :  { %v2727_v40 = vsel %vm225_vm6, %v2705_v39, -inf }
 0xe59   :  { %2728 = vmax.xlane.f32.xlu1 %v2727_v40  ;;  %2725 = vmax.xlane.f32.xlu0 %v2724_v41 }
 0xe6a   :  { %2870 = vrot.lane.b32.xlu1 %v5015_v44, %s4609_s1 }
 0xe6e   :  { %2946 = vrot.lane.b32.xlu1 %v5039_v50, %s4609_s1 }
 0xe6f   :  { %2794 = vrot.lane.b32.xlu0 %v5017_v55, %s4609_s1 }
 0xe70   :  { %v2708_v10 = vpop.xlane.xlu0 %2707 }
 0xe71   :  { %v2730_v17 = vsub.f32 %v2698_v46, %v2708_v10 }
 0xe72   :  { %3022 = vrot.lane.b32.xlu1 %v5035_v58, %s4609_s1 }
 0xe73   :  { %3098 = vrot.lane.b32.xlu0 %v5043_v57, %s4609_s1  ;;  %v2738_v42 = vmul.f32 1.442695, %v2730_v17 }
 0xe75   :  { %4479 = vpow2.f32 %v2738_v42 }
 0xe76   :  { %3174 = vrot.lane.b32.xlu1 %v5049_v60, %s4609_s1 }
 0xe77   :  { %v2711_v43 = vpop.xlane.xlu1 %2710 }
 0xe78   :  { %v2731_v44 = vsub.f32 %v2699_v8, %v2711_v43 }
 0xe7a   :  { %v2740_v45 = vmul.f32 1.442695, %v2731_v44 }
 0xe7c   :  { %4481 = vpow2.f32 %v2740_v45 }
 0xe7f   :  { %v5135_v50 = vpop.eup %4479 }
 0xe80   :  { %v2754_v55 = vsel %vm225_vm6, %v5135_v50, 0.0 }
 0xe86   :  { %v5139_v58 = vpop.eup %4481 }
 0xe87   :  { %v2757_v57 = vsel %vm225_vm6, %v5139_v58, 0.0 }
 0xe92   :  { %2755 = vadd.xlane.f32.xlu0 %v2754_v55 }
 0xe9a   :  { %2758 = vadd.xlane.f32.xlu1 %v2757_v57 }
 0xeda   :  { %v2717_v60 = vpop.xlane.xlu0 %2716 }
 0xedb   :  { %v2733_v61 = vsub.f32 %v2701_v18, %v2717_v60 }
 0xedd   :  { %v2744_v63 = vmul.f32 1.442695, %v2733_v61 }
 0xede   :  { %v2714_v1 = vpop.xlane.xlu0 %2713 }
 0xedf   :  { %4483 = vpow2.f32 %v2744_v63  ;;  %v2732_v2 = vsub.f32 %v2700_v21, %v2714_v1 }
 0xee1   :  { %v2742_v49 = vmul.f32 1.442695, %v2732_v2 }
 0xee2   :  { %v2723_v4 = vpop.xlane.xlu1 %2722  ;;  %v2720_v53 = vpop.xlane.xlu0 %2719 }
 0xee3   :  { %4485 = vpow2.f32 %v2742_v49  ;;  %v2735_v51 = vsub.f32 %v2703_v32, %v2723_v4  ;;  %v2734_v52 = vsub.f32 %v2702_v29, %v2720_v53  ;;  %v3916_v49 = vld [vmem:[%s5295_s3 + $0x20] sm:$0xff]  ;;  %v3917_v4 = vld [vmem:[%s5295_s3 + $0x28] sm:$0xff] }
 0xee4   :  { %v4377_v53 = vpack.c.bf16 %v3917_v4, %v3916_v49 }
 0xee5   :  { %v2748_v54 = vmul.f32 1.442695, %v2735_v51  ;;  %v2746_v56 = vmul.f32 1.442695, %v2734_v52  ;;  %v3919_v51 = vld [vmem:[%s5295_s3 + $0x38] sm:$0xff] }
 0xee6   :  { %v2729_v46 = vpop.xlane.xlu1 %2728  ;;  %v2726_v5 = vpop.xlane.xlu0 %2725 }
 0xee7   :  { %4487 = vpow2.f32 %v2748_v54  ;;  %v2737_v6 = vsub.f32 %v2705_v39, %v2729_v46  ;;  %v2736_v48 = vsub.f32 %v2704_v38, %v2726_v5 }
 0xee8   :  { %4489 = vpow2.f32 %v2746_v56 }
 0xee9   :  { %v4484_v7 = vpop.eup %4483  ;;  %v2752_v8 = vmul.f32 1.442695, %v2737_v6  ;;  %v2750_v9 = vmul.f32 1.442695, %v2736_v48 }
 0xeea   :  { %v2871_v11 = vpop.permute.xlu1 %2870  ;;  %v2795_v12 = vpop.permute.xlu0 %2794  ;;  %v2763_v13 = vsel %vm225_vm6, %v4484_v7, 0.0 }
 0xeeb   :  { %4491 = vpow2.f32 %v2752_v8  ;;  %4254 = vmatpush3.msra.mxu1 %v2871_v11  ;;  %2764 = vadd.xlane.f32.xlu1 %v2763_v13 }
 0xeec   :  { %4493 = vpow2.f32 %v2750_v9  ;;  %4249 = vmatpush3.msra.mxu0 %v2795_v12  ;;  %4263 = vmatprep.subr.mxu1 %v4603_v47 }
 0xeed   :  { %v4486_v14 = vpop.eup %4485  ;;  %4258 = vmatprep.subr.mxu0 %v4603_v47 }
 0xeee   :  { %v2760_v15 = vsel %vm225_vm6, %v4486_v14, 0.0  ;;  %v2947_v25 = vpop.permute.xlu1 %2946  ;;  %v3099_v26 = vpop.permute.xlu0 %3098 }
 0xeef   :  { %2761 = vadd.xlane.f32.xlu0 %v2760_v15 }
 0xef1   :  { %v4488_v16 = vpop.eup %4487 }
 0xef2   :  { %v4490_v18 = vpop.eup %4489  ;;  %v2769_v19 = vsel %vm225_vm6, %v4488_v16, 0.0  ;;  %v3023_v27 = vpop.permute.xlu1 %3022 }
 0xef3   :  { %2770 = vadd.xlane.f32.xlu1 %v2769_v19  ;;  %v2766_v20 = vsel %vm225_vm6, %v4490_v18, 0.0 }
 0xef4   :  { %2767 = vadd.xlane.f32.xlu0 %v2766_v20 }
 0xef5   :  { %v5149_v21 = vpop.eup %4491 }
 0xef6   :  { %v5151_v22 = vpop.eup %4493  ;;  %v2775_v23 = vsel %vm225_vm6, %v5149_v21, 0.0  ;;  %v3175_v29 = vpop.permute.xlu1 %3174 }
 0xef7   :  { %2776 = vadd.xlane.f32.xlu1 %v2775_v23  ;;  %v2772_v24 = vsel %vm225_vm6, %v5151_v22, 0.0 }
 0xef8   :  { %2773 = vadd.xlane.f32.xlu0 %v2772_v24 }
 0xf08   :  { %3326 = vrot.lane.b32.xlu1 %v5057_v62, %s4609_s1 }
 0xf0e   :  { %3250 = vrot.lane.b32.xlu0 %v5045_v59, %s4609_s1 }
 0xf1f   :  { %v2756_v28 = vpop.xlane.xlu0 %2755 }
 0xf20   :  { %4495 = vrcp.f32 %v2756_v28 }
 0xf27   :  { %v2759_v30 = vpop.xlane.xlu1 %2758 }
 0xf28   :  { %4497 = vrcp.f32 %v2759_v30 }
 0xf2a   :  { %v4496_v31 = vpop.eup %4495 }
 0xf2b   :  { %v2786_v32 = vmul.f32 %v4496_v31, %v5135_v50 }
 0xf2d   :  { %4251 = vmatmul.mubr.msk.f32.vlgmr.msra.gmra.mrb[24].mxu0 %vm225_vm6, %v2786_v32 }
 0xf2e   :  { %4259 = vmatpush3.msra.mxu0 %v2947_v25  ;;  %4260 = vmatprep.mubr.msk.f32.mxu0 %vm4604_vm5, %v4603_v47 }
 0xf2f   :  { %4268 = vmatprep.subr.mxu0 %v4603_v47 }
 0xf32   :  { %v4498_v59 = vpop.eup %4497 }
 0xf33   :  { %v2787_v62 = vmul.f32 %v4498_v59, %v5139_v58 }
 0xf35   :  { %4256 = vmatmul.mubr.msk.f32.vlgmr.msra.gmra.mrb[34].mxu1 %vm225_vm6, %v2787_v62 }
 0xf36   :  { %4264 = vmatpush3.msra.mxu1 %v3023_v27  ;;  %4265 = vmatprep.mubr.msk.f32.mxu1 %vm4604_vm5, %v4603_v47  ;;  %v3920_v27 = vld [vmem:[#allocation5 + $0xb] ss:$0 sm:$0xff] }
 0xf37   :  { %4273 = vmatprep.subr.mxu1 %v4603_v47 }
 0xf78   :  { %v2765_v33 = vpop.xlane.xlu1 %2764 }
 0xf79   :  { %4499 = vrcp.f32 %v2765_v33 }
 0xf7c   :  { %v2762_v34 = vpop.xlane.xlu0 %2761 }
 0xf7d   :  { %4501 = vrcp.f32 %v2762_v34 }
 0xf80   :  { %v2771_v35 = vpop.xlane.xlu1 %2770 }
 0xf81   :  { %4503 = vrcp.f32 %v2771_v35  ;;  %v2768_v36 = vpop.xlane.xlu0 %2767 }
 0xf82   :  { %4505 = vrcp.f32 %v2768_v36 }
 0xf83   :  { %v4500_v37 = vpop.eup %4499 }
 0xf84   :  { %v2789_v38 = vmul.f32 %v4500_v37, %v4484_v7  ;;  %v2777_v39 = vpop.xlane.xlu1 %2776 }
 0xf85   :  { %4507 = vrcp.f32 %v2777_v39  ;;  %v2774_v40 = vpop.xlane.xlu0 %2773 }
 0xf86   :  { %4509 = vrcp.f32 %v2774_v40  ;;  %4266 = vmatmul.mubr.msk.f32.vlgmr.msra.gmra.mrb[36].mxu1 %vm225_vm6, %v2789_v38 }
 0xf87   :  { %v4502_v41 = vpop.eup %4501  ;;  %4274 = vmatpush3.msra.mxu1 %v3175_v29  ;;  %4275 = vmatprep.mubr.msk.f32.mxu1 %vm4604_vm5, %v4603_v47 }
 0xf88   :  { %v2788_v10 = vmul.f32 %v4502_v41, %v4486_v14  ;;  %4283 = vmatprep.subr.mxu1 %v4603_v47  ;;  %v3327_v45 = vpop.permute.xlu1 %3326 }
 0xf89   :  { %v3251_v55 = vpop.permute.xlu0 %3250 }
 0xf8a   :  { %4261 = vmatmul.mubr.msk.f32.vlgmr.msra.gmra.mrb[26].mxu0 %vm225_vm6, %v2788_v10  ;;  %v3925_v10 = vld [vmem:[%s5296_s4 + $0x20] sm:$0xff] }
 0xf8b   :  { %v4504_v17 = vpop.eup %4503  ;;  %4269 = vmatpush3.msra.mxu0 %v3099_v26  ;;  %4270 = vmatprep.mubr.msk.f32.mxu0 %vm4604_vm5, %v4603_v47 }
 0xf8c   :  { %v4506_v42 = vpop.eup %4505  ;;  %v2791_v43 = vmul.f32 %v4504_v17, %v4488_v16  ;;  %4278 = vmatprep.subr.mxu0 %v4603_v47  ;;  %v3926_v17 = vld [vmem:[%s5296_s4 + $0x28] sm:$0xff] }
 0xf8d   :  { %v2790_v44 = vmul.f32 %v4506_v42, %v4490_v18  ;;  %v3927_v42 = vld [vmem:[%s5296_s4 + $0x30] sm:$0xff] }
 0xf8e   :  { %4276 = vmatmul.mubr.msk.f32.vlgmr.msra.gmra.mrb[38].mxu1 %vm225_vm6, %v2791_v43  ;;  %v4385_v43 = vpack.c.bf16 %v3926_v17, %v3925_v10 }
 0xf8f   :  { %v4508_v50 = vpop.eup %4507  ;;  %4271 = vmatmul.mubr.msk.f32.vlgmr.msra.gmra.mrb[28].mxu0 %vm225_vm6, %v2790_v44  ;;  %4284 = vmatpush3.msra.mxu1 %v3327_v45  ;;  %v3928_v44 = vld [vmem:[%s5296_s4 + $0x38] sm:$0xff] }
 0xf90   :  { %v4510_v58 = vpop.eup %4509  ;;  %v2793_v57 = vmul.f32 %v4508_v50, %v5149_v21  ;;  %4279 = vmatpush3.msra.mxu0 %v3251_v55  ;;  %4280 = vmatprep.mubr.msk.f32.mxu0 %vm4604_vm5, %v4603_v47  ;;  %v4389_v45 = vpack.c.bf16 %v3928_v44, %v3927_v42  ;;  %v3932_v50 = vld [vmem:[%s5297_s5 + $0x40] sm:$0xff]  ;;  %v3933_v55 = vld [vmem:[%s5297_s5 + $0x48] sm:$0xff] }
 0xf91   :  { %v2792_v60 = vmul.f32 %v4510_v58, %v5151_v22  ;;  %4285 = vmatprep.mubr.msk.f32.mxu1 %vm4604_vm5, %v4603_v47  ;;  %4378 = vmatprep.subr.bf16.mxu0 %v4377_v53  ;;  %v3918_v47 = vld [vmem:[%s5295_s3 + $0x30] sm:$0xff] }
 0xf92   :  { %4286 = vmatmul.mubr.msk.f32.vlgmr.msra.gmra.mrb[40].mxu1 %vm225_vm6, %v2793_v57  ;;  %v4381_v52 = vpack.c.bf16 %v3919_v51, %v3918_v47  ;;  %4386 = vmatprep.subr.bf16.mxu1 %v4385_v43  ;;  %v3934_v58 = vld [vmem:[%s5297_s5 + $0x50] sm:$0xff]  ;;  %v4393_v57 = vpack.c.bf16 %v3933_v55, %v3932_v50 }
 0xf93   :  { %4281 = vmatmul.mubr.msk.f32.vlgmr.msra.gmra.mrb[30].mxu0 %vm225_vm6, %v2792_v60  ;;  %4388 = vmatpush3.bf16.msra.mxu1 %v4385_v43  ;;  %v3935_v60 = vld [vmem:[%s5297_s5 + $0x58] sm:$0xff] }
 0xf94   :  { %4380 = vmatpush3.bf16.msra.mxu0 %v4377_v53  ;;  %4390 = vmatprep.subr.bf16.mxu1 %v4389_v45 }
 0xf95   :  { %4382 = vmatprep.subr.bf16.mxu0 %v4381_v52 }
 0xf97   :  { %4392 = vmatpush3.bf16.msra.mxu1 %v4389_v45 }
 0xf98   :  { %4384 = vmatpush3.bf16.msra.mxu0 %v4381_v52 }
 0xf99   :  { %4394 = vmatprep.subr.bf16.mxu0 %v4393_v57 }
0x1000   :  { %v2866_v61 = vpop.f32.mrb[24].mxu0 }
0x1001   :  { %v4252_v63 = vpop.f32.mrb[25].mxu0 }
0x1002   :  { %v3936_v63 = vld [vmem:[%s5297_s5 + $0x60] sm:$0xff] }
0x1008   :  { %v2942_v1 = vpop.f32.mrb[34].mxu1 }
0x1009   :  { %v4257_v2 = vpop.f32.mrb[35].mxu1 }
0x1059   :  { %v3094_v54 = vpop.f32.mrb[36].mxu1 }
0x105a   :  { %3406 = vrot.lane.b32.xlu1 %v3094_v54, %s4601_s12  ;;  %v4267_v56 = vpop.f32.mrb[37].mxu1 }
0x105d   :  { %v3018_v46 = vpop.f32.mrb[26].mxu0 }
0x105e   :  { %3404 = vrot.lane.b32.xlu0 %v3018_v46, %s4601_s12  ;;  %v4262_v5 = vpop.f32.mrb[27].mxu0 }
0x1061   :  { %v3246_v6 = vpop.f32.mrb[38].mxu1 }
0x1062   :  { %v3170_v48 = vpop.f32.mrb[28].mxu0  ;;  %3414 = vrot.lane.b32.xlu1 %v3246_v6, %s4610_s26  ;;  %v4277_v7 = vpop.f32.mrb[39].mxu1 }
0x1063   :  { %3412 = vrot.lane.b32.xlu0 %v3170_v48, %s4610_s26  ;;  %v4272_v8 = vpop.f32.mrb[29].mxu0 }
0x1065   :  { %v3398_v9 = vpop.f32.mrb[40].mxu1 }
0x1066   :  { %v3322_v11 = vpop.f32.mrb[30].mxu0  ;;  %3422 = vrot.lane.b32.xlu1 %v3398_v9, %s4611_s27  ;;  %v4287_v12 = vpop.f32.mrb[41].mxu1 }
0x1067   :  { %3420 = vrot.lane.b32.xlu0 %v3322_v11, %s4611_s27  ;;  %v4282_v13 = vpop.f32.mrb[31].mxu0  ;;  %v3923_v12 = vld [vmem:[#allocation5 + $0xc] ss:$0 sm:$0xff] }
0x10cc   :  { %v3407_v14 = vpop.permute.xlu1 %3406 }
0x10cd   :  { %v3427_v19 = vsel %vm225_vm6, %v2942_v1, %v3407_v14  ;;  %v3937_v1 = vld [vmem:[%s5297_s5 + $0x68] sm:$0xff] }
0x10ce   :  { %v4401_v2 = vpack.c.bf16 %v3937_v1, %v3936_v63 }
0x10d0   :  { %v3405_v15 = vpop.permute.xlu0 %3404 }
0x10d1   :  { %v3426_v20 = vsel %vm225_vm6, %v2866_v61, %v3405_v15  ;;  %v4397_v61 = vpack.c.bf16 %v3935_v60, %v3934_v58  ;;  %v3924_v15 = vld [vmem:[#allocation5 + $0xd] ss:$0 sm:$0xff] }
0x10d4   :  { %v3415_v16 = vpop.permute.xlu1 %3414 }
0x10d5   :  { %v3413_v18 = vpop.permute.xlu0 %3412  ;;  %v3429_v21 = vsel %vm1582_vm9, %v3427_v19, %v3415_v16 }
0x10d6   :  { %v3428_v23 = vsel %vm1582_vm9, %v3426_v20, %v3413_v18 }
0x10d8   :  { %v3423_v22 = vpop.permute.xlu1 %3422 }
0x10d9   :  { %v3431_v24 = vsel %vm1585_vm10, %v3429_v21, %v3423_v22  ;;  %v3421_v25 = vpop.permute.xlu0 %3420 }
0x10da   :  { %v3430_v26 = vsel %vm1585_vm10, %v3428_v23, %v3421_v25  ;;  %v3938_v23 = vld [vmem:[%s5297_s5 + $0x70] sm:$0xff] }
0x10db   :  { %4296 = vmatprep.mubr.msk.f32.mxu0 %vm65_vm0, %v3430_v26  ;;  %v3929_v26 = vld [vmem:[#allocation5 + $0xe] ss:$0 sm:$0xff] }
0x10dc   :  { %4297 = vmatmul.mubr.msk.f32.vlgmr.msra.gmra.mrb[32].mxu0 %vm65_vm0, %v3431_v24  ;;  %v3939_v24 = vld [vmem:[%s5297_s5 + $0x78] sm:$0xff]  ;;  %s4612_s5 = smov [#allocation7]  }
0x10dd   :  { %4396 = vmatpush3.bf16.msra.mxu0 %v4393_v57  ;;  %v4405_v25 = vpack.c.bf16 %v3939_v24, %v3938_v23  ;;  %s3830_s1 = sshll.u32 %s4612_s5, 4  ;;  %s3831_s1 = int_to_ptr.vmem [resolvable:$true] %s3830_s1 }
0x10de   :  { %4398 = vmatprep.subr.bf16.mxu0 %v4397_v61  ;;  %s4571_s25 = scalar_lea.vmem %s3831_s1, 256  ;;  %p4576_p3 = scmp.lt.s32.totalorder %s3831_s1, %s3831_s1 }
0x10df   :  { %p4572_p2 = scmp.ne.s32.totalorder %s3831_s1, %s4571_s25  ;;  %p4577_p4 = scmp.lt.s32.totalorder %s4571_s25, %s4571_s25 }
0x10e1   :  { %4400 = vmatpush3.bf16.msra.mxu0 %v4397_v61  ;;  %p4578_p5 = por %p4577_p4, %p4576_p3 }
0x10e2   :  { %4402 = vmatprep.subr.bf16.mxu0 %v4401_v2 }
0x10e3   :  { %p4579_p6 = pnand %p4578_p5, %p4572_p2 }
0x10e5   :  { %4404 = vmatpush3.bf16.msra.mxu0 %v4401_v2 }
0x10e6   :  { %4406 = vmatprep.subr.bf16.mxu0 %v4405_v25 }
0x10e9   :  { %4408 = vmatpush3.bf16.msra.mxu0 %v4405_v25 }
0x11af   :  { %v4298_v28 = vpop.f32.mrb[32].mxu0 }
0x11b0   :  { %v3520_v29 = vadd.f32 %v4298_v28, %v3920_v27  ;;  %v3514_v30 = vpop.f32.mrb[33].mxu0 }
0x11b1   :  { %v3515_v31 = vadd.f32 %v3920_v27, %v3514_v30 }
0x11b2   :  { %v5216_v32 = vadd.f32 %v3520_v29, %v4985_v0 }
0x11b3   :  { %v5219_v59 = vadd.f32 %v3515_v31, %v4988_v3 }
0x11b4   :  { %v3530_v62 = vsel %vm65_vm0, %v5216_v32, 0.0 }
0x11b5   :  { %3531 = vadd.xlane.f32.xlu1 %v3530_v62  ;;  %v3527_v33 = vsel %vm65_vm0, %v5219_v59, 0.0 }
0x11b6   :  { %3528 = vadd.xlane.f32.xlu0 %v3527_v33  ;;  %v3940_v33 = vld [vmem:[#allocation5 + $0xf] ss:$0 sm:$0xff] }
0x1242   :  { %v3532_v34 = vpop.xlane.xlu1 %3531 }
0x1243   :  { %v3534_v35 = vmul.f32 0.03125, %v3532_v34  ;;  %v3529_v36 = vpop.xlane.xlu0 %3528 }
0x1244   :  { %v3533_v37 = vmul.f32 0.03125, %v3529_v36 }
0x1245   :  { %v3536_v38 = vsub.f32 %v5216_v32, %v3534_v35 }
0x1246   :  { %v3535_v0 = vsub.f32 %v5219_v59, %v3533_v37 }
0x1247   :  { %v3538_v40 = vmul.f32 %v3536_v38, %v3536_v38  ;;  %v3552_v18 = vmul.f32 %v3923_v12, %v3536_v38 }
0x1248   :  { %v3537_v39 = vmul.f32 %v3535_v0, %v3535_v0  ;;  %v3551_v13 = vmul.f32 %v3923_v12, %v3535_v0 }
0x1249   :  { %v3542_v41 = vsel %vm65_vm0, %v3538_v40, 0.0 }
0x124a   :  { %v3539_v3 = vsel %vm65_vm0, %v3537_v39, 0.0 }
0x124b   :  { %3540 = vadd.xlane.f32.xlu0 %v3539_v3 }
0x124f   :  { %3543 = vadd.xlane.f32.xlu0 %v3542_v41 }
0x12d8   :  { %v3541_v49 = vpop.xlane.xlu0 %3540 }
0x12d9   :  { %v3545_v4 = vmul.f32 0.032258064, %v3541_v49 }
0x12db   :  { %4511 = vrsqrt.f32 %v3545_v4  ;;  %vm3555_vm5 = vcmp.eq.f32.partialorder %v3545_v4, inf  ;;  %v3558_v54 = vand.u32 2147483648, %v3545_v4  ;;  %vm3557_vm6 = vcmp.eq.f32.partialorder %v3545_v4, 0.0 }
0x12dc   :  { %v3544_v53 = vpop.xlane.xlu0 %3543 }
0x12dd   :  { %v3546_v47 = vmul.f32 0.032258064, %v3544_v53 }
0x12df   :  { %4513 = vrsqrt.f32 %v3546_v47  ;;  %vm3562_vm7 = vcmp.eq.f32.partialorder %v3546_v47, inf  ;;  %v3565_v7 = vand.u32 2147483648, %v3546_v47  ;;  %vm3564_vm8 = vcmp.eq.f32.partialorder %v3546_v47, 0.0 }
0x12e5   :  { %v4512_v51 = vpop.eup %4511 }
0x12e6   :  { %v3554_v52 = vmul.f32 %v4512_v51, %v3545_v4 }
0x12e8   :  { %v3556_v56 = vsel %vm3555_vm5, %v3545_v4, %v3554_v52 }
0x12e9   :  { %v4514_v46 = vpop.eup %4513  ;;  %v3559_v5 = vsel %vm3557_vm6, %v3558_v54, %v3556_v56  ;;  %v3943_v56 = vld [vmem:[#allocation5 + $0x10] ss:$0 sm:$0xff] }
0x12ea   :  { %v3561_v6 = vmul.f32 %v4514_v46, %v3546_v47  ;;  %v3567_v48 = vadd.f32 1e-06, %v3559_v5 }
0x12ec   :  { %v3563_v8 = vsel %vm3562_vm7, %v3546_v47, %v3561_v6  ;;  %4515 = vrcp.f32 %v3567_v48  ;;  %v3944_v48 = vld [vmem:[#allocation5 + $0x11] ss:$0 sm:$0xff] }
0x12ed   :  { %v3566_v9 = vsel %vm3564_vm8, %v3565_v7, %v3563_v8 }
0x12ee   :  { %v3568_v11 = vadd.f32 1e-06, %v3566_v9 }
0x12f0   :  { %4517 = vrcp.f32 %v3568_v11 }
0x12f6   :  { %v4516_v14 = vpop.eup %4515 }
0x12f7   :  { %v3570_v16 = vmul.f32 %v4516_v14, %v3551_v13 }
0x12f9   :  { %v3577_v19 = vadd.f32 %v3924_v15, %v3570_v16 }
0x12fa   :  { %v4518_v20 = vpop.eup %4517 }
0x12fb   :  { %v3572_v21 = vmul.f32 %v4518_v20, %v3552_v18  ;;  %4307 = vmatprep.mubr.msk.f32.mxu1 %vm65_vm0, %v3577_v19 }
0x12fd   :  { %v3578_v22 = vadd.f32 %v3924_v15, %v3572_v21 }
0x12ff   :  { %4308 = vmatmul.mubr.msk.f32.vlgmr.msra.gmra.mrb[42].mxu1 %vm65_vm0, %v3578_v22 }
0x13d2   :  { %v4309_v27 = vpop.f32.mrb[42].mxu1 }
0x13d3   :  { %v3667_v28 = vadd.f32 %v4309_v27, %v3929_v26  ;;  %v3661_v29 = vpop.f32.mrb[43].mxu1 }
0x13d4   :  { %v3662_v30 = vadd.f32 %v3929_v26, %v3661_v29 }
0x13d5   :  { %v3671_v62 = vmax.f32 %v3667_v28, 0.0 }
0x13d6   :  { %v3670_v31 = vmax.f32 %v3662_v30, 0.0 }
0x13d8   :  { %4326 = vmatprep.mubr.msk.f32.mxu0 %vm1839_vm15, %v3670_v31 }
0x13d9   :  { %4327 = vmatmul.mubr.msk.f32.vlgmr.msra.gmra.mrb[34].mxu0 %vm1839_vm15, %v3671_v62 }
0x14ac   :  { %v4328_v34 = vpop.f32.mrb[34].mxu0 }
0x14ad   :  { %v3764_v35 = vadd.f32 %v4328_v34, %v3940_v33  ;;  %v3758_v36 = vpop.f32.mrb[35].mxu0 }
0x14ae   :  { %v3759_v37 = vadd.f32 %v3940_v33, %v3758_v36 }
0x14af   :  { %v3768_v38 = vadd.f32 %v3764_v35, %v5216_v32 }
0x14b0   :  { %v3767_v0 = vadd.f32 %v3759_v37, %v5219_v59 }
0x14b1   :  { %v3774_v39 = vsel %vm65_vm0, %v3768_v38, 0.0 }
0x14b2   :  { %3775 = vadd.xlane.f32.xlu1 %v3774_v39  ;;  %v3771_v3 = vsel %vm65_vm0, %v3767_v0, 0.0 }
0x14b3   :  { %3772 = vadd.xlane.f32.xlu0 %v3771_v3 }
0x153f   :  { %v3776_v40 = vpop.xlane.xlu1 %3775 }
0x1540   :  { %v3778_v41 = vmul.f32 0.03125, %v3776_v40  ;;  %v3773_v10 = vpop.xlane.xlu0 %3772 }
0x1541   :  { %v3777_v17 = vmul.f32 0.03125, %v3773_v10 }
0x1542   :  { %v3780_v42 = vsub.f32 %v3768_v38, %v3778_v41 }
0x1543   :  { %v3779_v43 = vsub.f32 %v3767_v0, %v3777_v17 }
0x1544   :  { %v3782_v44 = vmul.f32 %v3780_v42, %v3780_v42  ;;  %v3796_v46 = vmul.f32 %v3943_v56, %v3780_v42 }
0x1545   :  { %v3781_v45 = vmul.f32 %v3779_v43, %v3779_v43  ;;  %v3795_v6 = vmul.f32 %v3943_v56, %v3779_v43 }
0x1546   :  { %v3786_v50 = vsel %vm65_vm0, %v3782_v44, 0.0 }
0x1547   :  { %3787 = vadd.xlane.f32.xlu1 %v3786_v50  ;;  %v3783_v32 = vsel %vm65_vm0, %v3781_v45, 0.0 }
0x1548   :  { %3784 = vadd.xlane.f32.xlu0 %v3783_v32 }
0x15d4   :  { %v3788_v59 = vpop.xlane.xlu1 %3787 }
0x15d5   :  { %v3790_v55 = vmul.f32 0.032258064, %v3788_v59  ;;  %v3785_v58 = vpop.xlane.xlu0 %3784 }
0x15d6   :  { %v3789_v57 = vmul.f32 0.032258064, %v3785_v58 }
0x15d7   :  { %4519 = vrsqrt.f32 %v3790_v55  ;;  %vm3806_vm9 = vcmp.eq.f32.partialorder %v3790_v55, inf  ;;  %v3809_v1 = vand.u32 2147483648, %v3790_v55  ;;  %vm3808_vm10 = vcmp.eq.f32.partialorder %v3790_v55, 0.0 }
0x15d8   :  { %4521 = vrsqrt.f32 %v3789_v57  ;;  %vm3799_vm11 = vcmp.eq.f32.partialorder %v3789_v57, inf  ;;  %v3802_v4 = vand.u32 2147483648, %v3789_v57  ;;  %vm3801_vm12 = vcmp.eq.f32.partialorder %v3789_v57, 0.0 }
0x15e1   :  { %v4520_v60 = vpop.eup %4519 }
0x15e2   :  { %v4522_v61 = vpop.eup %4521  ;;  %v3805_v63 = vmul.f32 %v4520_v60, %v3790_v55 }
0x15e3   :  { %v3798_v2 = vmul.f32 %v4522_v61, %v3789_v57 }
0x15e4   :  { %v3807_v49 = vsel %vm3806_vm9, %v3790_v55, %v3805_v63 }
0x15e5   :  { %v3810_v53 = vsel %vm3808_vm10, %v3809_v1, %v3807_v49  ;;  %v3800_v47 = vsel %vm3799_vm11, %v3789_v57, %v3798_v2 }
0x15e6   :  { %v3812_v51 = vadd.f32 1e-06, %v3810_v53  ;;  %v3803_v52 = vsel %vm3801_vm12, %v3802_v4, %v3800_v47 }
0x15e7   :  { %v3811_v54 = vadd.f32 1e-06, %v3803_v52 }
0x15e8   :  { %4523 = vrcp.f32 %v3812_v51 }
0x15e9   :  { %4525 = vrcp.f32 %v3811_v54 }
0x15f2   :  { %v4524_v5 = vpop.eup %4523 }
0x15f3   :  { %v4526_v7 = vpop.eup %4525  ;;  %v3816_v8 = vmul.f32 %v4524_v5, %v3796_v46 }
0x15f4   :  { %v3814_v9 = vmul.f32 %v4526_v7, %v3795_v6 }
0x15f5   :  { %v3822_v11 = vadd.f32 %v3944_v48, %v3816_v8 }
0x15f6   :  { %v3821_v12 = vadd.f32 %v3944_v48, %v3814_v9 }
0x15f7   :  { %3824 = vst.msk [vmem:[#allocation7 + $0x8] sm:$0xff] %vm65_vm0, %v3822_v11 }
0x15f8   :  { %3823 = vst.msk [vmem:[#allocation7] sm:$0xff] %vm65_vm0, %v3821_v12 }
0x15f9   :  { %4582 = shalt.err (!%p4579_p6)
}
0x15fa   :  { %s4583_s26 = scalar_lea.hbm %s5299_s7, 256 }
0x15fb   :  { %p4584_p7 = scmp.ne.s32.totalorder %s5299_s7, %s4583_s26  ;;  %p4587_p8 = scmp.lt.u32.totalorder %s4583_s26, %s5299_s7 }
0x15fd   :  { %p4589_p9 = pnand %p4587_p8, %p4584_p7 }
0x15ff   :  { %4592 = shalt.err (!%p4589_p9)
}
0x1600   :  { %3836 = dma.vmem_to_hbm [thread:$0]  %s3831_s1, 256, %s5299_s7, [#allocation4], %s4600_s11, %s4600_s11, %s4601_s12  }
0x1601   :  { %4597 = dma.done.wait [#allocation4], 256  }
0x1602   :  { %4598 = vsyncadd [#allocation4], 4294967040 }
0x1603   :  { %3840 = vsyncpa [#allocation3], 1 }
0x1604   :  { %3841 = vsyncpa [#allocation6], 1 }
0x1605   :  { %3842 = vsyncpa [#allocation4], 1 }

</bundles_post_ra>
